<compile_context>
chip_gen: v5e
topology: v5e:2x2
jax: 0.10.0
libtpu: 0.0.40
codegen_flags: <defaults>
</compile_context>

<pallas_src>
import functools

import jax
import jax.numpy as jnp
from jax import lax
from jax.experimental import pallas as pl
from jax.experimental.pallas import tpu as pltpu

_SQRT_HALF = 0.7071067811865476


# ---------------------------------------------------------------------------
# Math helpers (plain jnp/lax: traced inside the kernel AND reused by the
# pure-JAX reference used for the correctness check in __main__).
# ---------------------------------------------------------------------------
def _erf_approx(x, *, use_pl_ops=False):
    # Abramowitz & Stegun 7.1.26 rational approximation of erf (~1.5e-7 abs err).
    a1, a2, a3, a4, a5 = 0.254829592, -0.284496736, 1.421413741, -1.453152027, 1.061405429
    p = 0.3275911
    sign = jnp.where(x >= 0.0, 1.0, -1.0)
    ax = jnp.abs(x)
    denom = 1.0 + p * ax
    if use_pl_ops:
        t = pl.reciprocal(denom, approx=True)   # EUP slot -> ~free alongside VPU/MXU
    else:
        t = 1.0 / denom
    poly = ((((a5 * t + a4) * t + a3) * t + a2) * t + a1) * t
    return sign * (1.0 - poly * jnp.exp(-ax * ax))


def _gelu(x, *, use_pl_ops=False):
    # nn.GELU() default: 0.5 * x * (1 + erf(x / sqrt(2)))
    return 0.5 * x * (1.0 + _erf_approx(x * _SQRT_HALF, use_pl_ops=use_pl_ops))


def _layernorm_blk(x, gamma, beta, eps=1e-5):
    # PyTorch nn.LayerNorm([T, C]) on a [b, T, C] block: joint (T, C) statistics
    # per batch element, biased variance.  Chained single-axis sums (robust
    # Mosaic lowering); the centered form is kept for numerical stability and
    # xc is reused for both the variance and the normalization.
    n = x.shape[1] * x.shape[2]
    s = jnp.sum(jnp.sum(x, axis=2, keepdims=True), axis=1, keepdims=True)
    mu = s * (1.0 / n)
    xc = x - mu
    ss = jnp.sum(jnp.sum(xc * xc, axis=2, keepdims=True), axis=1, keepdims=True)
    var = ss * (1.0 / n)
    return xc * lax.rsqrt(var + eps) * gamma[None] + beta[None]


def _mixer2d_triu_block(x, ln, wt, bt, wch, bch, *, use_pl_ops=False):
    """One Mixer2dTriU forward on a whole [b, T, C] batch block.

    ln : [4, T, C] f32   (gamma1, beta1, gamma2, beta2)
    wt : [T, T]  bf16    TriU weights as a lower-triangular matrix
    bt : [T, 1]  f32     TriU per-time-step biases
    wch: [2, C, C] bf16  channelMixer dense_1/dense_2 weights, pre-transposed (in, out)
    bch: [2, 1, C] f32   channelMixer biases
    """
    b, T, C = x.shape
    mxu_dt = wt.dtype

    xn = _layernorm_blk(x, ln[0], ln[1])                                # LN_1
    # TriU time mixer as ONE batched MXU matmul over the block:
    #   tmix[b, t, c] = sum_{s<=t} W[t, s] * xn[b, s, c] + bt[t]
    wt_b = jnp.broadcast_to(wt, (b, T, T))
    tmix = jnp.einsum("bts,bsc->btc", wt_b, xn.astype(mxu_dt),
                      preferred_element_type=jnp.float32) + bt[None]
    z = tmix + x                                                        # residual
    zn = _layernorm_blk(z, ln[2], ln[3])                                # LN_2

    # Channel MLP-mixer: fold (b, T) into the MXU M dimension (T, S are
    # multiples of the 8-row sublane tile, so the reshape is layout-compatible).
    zn2 = zn.reshape(b * T, C)
    h = jnp.dot(zn2.astype(mxu_dt), wch[0],
                preferred_element_type=jnp.float32) + bch[0]            # dense_1
    h = _gelu(h, use_pl_ops=use_pl_ops)                                 # GELU
    y2 = jnp.dot(h.astype(mxu_dt), wch[1],
                 preferred_element_type=jnp.float32) + bch[1]           # dense_2
    return (zn2 + y2).reshape(b, T, C)                                  # residual


# ---------------------------------------------------------------------------
# Fused Pallas kernel: for one batch block compute both Mixer2dTriU layers and
# write the concatenated [inputs | mix(inputs) | scale_mix(y)] slabs directly.
# ---------------------------------------------------------------------------
def mult_mixer_kernel(x_ref, y_ref,
                      ln_m, wt_m, bt_m, wch_m, bch_m,     # mix_layer params (grid-invariant)
                      ln_s, wt_s, bt_s, wch_s, bch_s,     # scale_mix_layer params
                      o_ref):
    T = x_ref.shape[1]
    S = y_ref.shape[1]

    x = x_ref[...]                                         # [b_blk, T, C]
    # Pass-through copy of `inputs`: single block-wide store.
    o_ref[:, 0:T, :] = x.astype(o_ref.dtype)

    xo = _mixer2d_triu_block(x, ln_m[...], wt_m[...], bt_m[...],
                             wch_m[...], bch_m[...], use_pl_ops=True)
    o_ref[:, T:2 * T, :] = xo.astype(o_ref.dtype)          # mix_layer(inputs)

    yo = _mixer2d_triu_block(y_ref[...], ln_s[...], wt_s[...], bt_s[...],
                             wch_s[...], bch_s[...], use_pl_ops=True)
    o_ref[:, 2 * T:2 * T + S, :] = yo.astype(o_ref.dtype)  # scale_mix_layer(y)


# ---------------------------------------------------------------------------
# Wrapper: single pallas_call for the whole MultTime2dMixer forward.
# ---------------------------------------------------------------------------
def _multi_core_hint():
    """True if the chip has >1 TensorCore (grid 'parallel' axis actually shards)."""
    try:
        kind = jax.devices()[0].device_kind.lower()
    except Exception:
        return False
    return any(tag in kind for tag in ("v7", "7x", "v5p", "v4", "v3"))


def _pick_batch_block(B, multi_core, cap=8):
    if B <= 1:
        return max(B, 1)
    divisors = [d for d in range(1, min(cap, B) + 1) if B % d == 0]
    if multi_core:
        # Keep >= 2 grid steps so the batch axis can shard across TensorCores.
        cands = [d for d in divisors if B // d >= 2]
        if cands:
            return max(cands)
    # Single TensorCore: the grid is a serial loop -> fewest, fattest steps.
    return max(divisors)


def _param_bytes(T, C):
    return (4 * T * C * 4      # ln  (f32)
            + T * T * 2        # wt  (bf16)
            + T * 1 * 4        # bt  (f32)
            + 2 * C * C * 2    # wch (bf16)
            + 2 * 1 * C * 4)   # bch (f32)


def mult_time_2d_mixer(inputs, y, params_mix, params_scale, b_blk=None):
    """MultTime2dMixer.forward: cat([inputs, mix(inputs), scale_mix(y)], dim=1)."""
    B, T, C = inputs.shape
    By, S, Cy = y.shape
    assert By == B and Cy == C
    if b_blk is None:
        b_blk = _pick_batch_block(B, _multi_core_hint())
    assert B % b_blk == 0
    t_out = 2 * T + S

    ln_m, wt_m, bt_m, wch_m, bch_m = params_mix
    ln_s, wt_s, bt_s, wch_s, bch_s = params_scale

    const2 = lambda i: (0, 0)
    const3 = lambda i: (0, 0, 0)

    # VMEM budget: double-buffered activation blocks + grid-invariant params.
    act_bytes = 2 * 4 * b_blk * (T * C + S * C + t_out * C)
    need = act_bytes + 2 * (_param_bytes(T, C) + _param_bytes(S, C))
    vmem_limit = int(min(64 << 20, max(32 << 20, 4 * need)))

    return pl.pallas_call(
        mult_mixer_kernel,
        out_shape=jax.ShapeDtypeStruct((B, t_out, C), jnp.float32),
        grid_spec=pltpu.PrefetchScalarGridSpec(
            num_scalar_prefetch=0,
            grid=(B // b_blk,),
            in_specs=[
                pl.BlockSpec((b_blk, T, C), lambda i: (i, 0, 0)),   # inputs block
                pl.BlockSpec((b_blk, S, C), lambda i: (i, 0, 0)),   # y block
                # mix_layer params (constant index maps -> fetched once)
                pl.BlockSpec((4, T, C), const3),                    # LN params
                pl.BlockSpec((T, T), const2),                       # W_tri (bf16)
                pl.BlockSpec((T, 1), const2),                       # b_tri
                pl.BlockSpec((2, C, C), const3),                    # W1^T / W2^T (bf16)
                pl.BlockSpec((2, 1, C), const3),                    # b1 / b2
                # scale_mix_layer params
                pl.BlockSpec((4, S, C), const3),
                pl.BlockSpec((S, S), const2),
                pl.BlockSpec((S, 1), const2),
                pl.BlockSpec((2, C, C), const3),
                pl.BlockSpec((2, 1, C), const3),
            ],
            out_specs=pl.BlockSpec((b_blk, t_out, C), lambda i: (i, 0, 0)),
        ),
        compiler_params=pltpu.CompilerParams(
            dimension_semantics=("parallel",),     # batch-block axis
            vmem_limit_bytes=vmem_limit,
        ),
    )(inputs, y, ln_m, wt_m, bt_m, wch_m, bch_m, ln_s, wt_s, bt_s, wch_s, bch_s)


# ---------------------------------------------------------------------------
# Deterministic parameter init (mirrors the module's __init__ shapes), packed
# per layer into 5 arrays; MXU weight operands are then cast to bf16.
# ---------------------------------------------------------------------------
def init_mixer2d_params(key, T, C):
    kwt, kbt, kw1, kb1, kw2, kb2 = jax.random.split(key, 6)

    # LayerNorm([T, C]) default affine init: weight=1, bias=0 -> [4, T, C]
    ln = jnp.stack([
        jnp.ones((T, C), jnp.float32), jnp.zeros((T, C), jnp.float32),
        jnp.ones((T, C), jnp.float32), jnp.zeros((T, C), jnp.float32),
    ])

    # TriU: row t holds nn.Linear(t+1, 1).weight (fan_in = t+1); strictly-upper
    # entries are zero (never used by the PyTorch loop).
    row_bound = 1.0 / jnp.sqrt(jnp.arange(1, T + 1, dtype=jnp.float32))[:, None]
    wt = jnp.tril(jax.random.uniform(kwt, (T, T), jnp.float32, -1.0, 1.0) * row_bound)
    bt = jax.random.uniform(kbt, (T, 1), jnp.float32, -1.0, 1.0) * row_bound

    # MixerBlock(C, C): two Linear(C, C) layers, PyTorch default uniform init.
    cb = 1.0 / jnp.sqrt(jnp.float32(C))
    w1 = jax.random.uniform(kw1, (C, C), jnp.float32, -cb, cb)   # [out, in]
    b1 = jax.random.uniform(kb1, (1, C), jnp.float32, -cb, cb)
    w2 = jax.random.uniform(kw2, (C, C), jnp.float32, -cb, cb)
    b2 = jax.random.uniform(kb2, (1, C), jnp.float32, -cb, cb)
    wch = jnp.stack([w1.T, w2.T])      # pre-transposed to (in, out): [2, C, C]
    bch = jnp.stack([b1, b2])          # [2, 1, C]

    return (ln, wt, bt, wch, bch)


def pack_params_for_mxu(params):
    ln, wt, bt, wch, bch = params
    return (ln, wt.astype(jnp.bfloat16), bt, wch.astype(jnp.bfloat16), bch)


# ---------------------------------------------------------------------------
# Pure-JAX references (no Pallas) for tolerance checks.
# ---------------------------------------------------------------------------
def mult_time_2d_mixer_ref(inputs, y, pm, ps):
    """Matched-precision reference: same bf16-MXU block math as the kernel."""
    xo = _mixer2d_triu_block(inputs, *pm, use_pl_ops=False)
    yo = _mixer2d_triu_block(y, *ps, use_pl_ops=False)
    return jnp.concatenate([inputs, xo, yo], axis=1)


def _mixer2d_triu_ref_f32(x, params):
    """Full-precision reference with exact erf-GELU (PyTorch module semantics)."""
    ln, wt, bt, wch, bch = params
    xn = _layernorm_blk(x, ln[0], ln[1])
    tmix = jnp.einsum("ts,bsc->btc", wt, xn) + bt[None]
    z = tmix + x
    zn = _layernorm_blk(z, ln[2], ln[3])
    h = zn @ wch[0] + bch[0]
    h = 0.5 * h * (1.0 + lax.erf(h * _SQRT_HALF))
    return zn + (h @ wch[1] + bch[1])


def mult_time_2d_mixer_ref_f32(inputs, y, pm, ps):
    return jnp.concatenate(
        [inputs, _mixer2d_triu_ref_f32(inputs, pm), _mixer2d_triu_ref_f32(y, ps)], axis=1)


if __name__ == "__main__":
    B, T, S, C = 2, 16, 8, 4  # batch, time_step, scale_dim, channel

    key = jax.random.PRNGKey(0)
    k_in, k_y, k_pm, k_ps = jax.random.split(key, 4)

    inputs = jax.random.normal(k_in, (B, T, C), dtype=jnp.float32)
    y = jax.random.normal(k_y, (B, S, C), dtype=jnp.float32)

    params_mix_f32 = init_mixer2d_params(k_pm, T, C)     # mix_layer (time_step)
    params_scale_f32 = init_mixer2d_params(k_ps, S, C)   # scale_mix_layer (scale_dim)
    params_mix = pack_params_for_mxu(params_mix_f32)
    params_scale = pack_params_for_mxu(params_scale_f32)

    fwd = jax.jit(mult_time_2d_mixer)
    out = jax.block_until_ready(fwd(inputs, y, params_mix, params_scale))

    assert out.shape == (B, 2 * T + S, C), out.shape
    assert bool(jnp.all(jnp.isfinite(out)))

    # 1) Strict check vs. a matched-precision (bf16 MXU operands) JAX reference.
    ref = mult_time_2d_mixer_ref(inputs, y, params_mix, params_scale)
    err_matched = float(jnp.max(jnp.abs(out - ref)))
    assert err_matched < 2e-2, f"kernel vs matched-precision reference: {err_matched}"

    # 2) Fidelity check vs. the full-f32 / exact-erf PyTorch-semantics reference
    #    (slack accounts for bf16 MXU operand rounding).
    ref32 = mult_time_2d_mixer_ref_f32(inputs, y, params_mix_f32, params_scale_f32)
    err_f32 = float(jnp.max(jnp.abs(out - ref32)))
    assert err_f32 < 1e-1, f"kernel vs f32/exact-GELU reference: {err_f32}"

    print("KERNEL_OK")
</pallas_src>

<mosaic_0001>
module attributes {stable_mosaic.version = 11 : i64} {
  func.func @mult_mixer_kernel(%arg0: i32, %arg1: memref<2x16x4xf32, #tpu.memory_space<vmem>>, %arg2: memref<2x8x4xf32, #tpu.memory_space<vmem>>, %arg3: memref<4x16x4xf32, #tpu.memory_space<vmem>>, %arg4: memref<16x16xbf16, #tpu.memory_space<vmem>>, %arg5: memref<16x1xf32, #tpu.memory_space<vmem>>, %arg6: memref<2x4x4xbf16, #tpu.memory_space<vmem>>, %arg7: memref<2x1x4xf32, #tpu.memory_space<vmem>>, %arg8: memref<4x8x4xf32, #tpu.memory_space<vmem>>, %arg9: memref<8x8xbf16, #tpu.memory_space<vmem>>, %arg10: memref<8x1xf32, #tpu.memory_space<vmem>>, %arg11: memref<2x4x4xbf16, #tpu.memory_space<vmem>>, %arg12: memref<2x1x4xf32, #tpu.memory_space<vmem>>, %arg13: memref<2x40x4xf32, #tpu.memory_space<vmem>>) attributes {dimension_semantics = [#tpu.dimension_semantics<parallel>], iteration_bounds = array<i64: 1>, scalar_prefetch = 0 : i64, scratch_operands = 0 : i64, tpu.core_type = #tpu.core_type<tc>, window_params = [{transform_indices = @transform_0, window_bounds = array<i64: 2, 16, 4>}, {transform_indices = @transform_1, window_bounds = array<i64: 2, 8, 4>}, {pipeline_mode = #tpu.pipeline_mode<synchronous>, transform_indices = @transform_2, window_bounds = array<i64: 4, 16, 4>}, {pipeline_mode = #tpu.pipeline_mode<synchronous>, transform_indices = @transform_3, window_bounds = array<i64: 16, 16>}, {pipeline_mode = #tpu.pipeline_mode<synchronous>, transform_indices = @transform_4, window_bounds = array<i64: 16, 1>}, {pipeline_mode = #tpu.pipeline_mode<synchronous>, transform_indices = @transform_5, window_bounds = array<i64: 2, 4, 4>}, {pipeline_mode = #tpu.pipeline_mode<synchronous>, transform_indices = @transform_6, window_bounds = array<i64: 2, 1, 4>}, {pipeline_mode = #tpu.pipeline_mode<synchronous>, transform_indices = @transform_7, window_bounds = array<i64: 4, 8, 4>}, {pipeline_mode = #tpu.pipeline_mode<synchronous>, transform_indices = @transform_8, window_bounds = array<i64: 8, 8>}, {pipeline_mode = #tpu.pipeline_mode<synchronous>, transform_indices = @transform_9, window_bounds = array<i64: 8, 1>}, {pipeline_mode = #tpu.pipeline_mode<synchronous>, transform_indices = @transform_10, window_bounds = array<i64: 2, 4, 4>}, {pipeline_mode = #tpu.pipeline_mode<synchronous>, transform_indices = @transform_11, window_bounds = array<i64: 2, 1, 4>}, {transform_indices = @transform_12, window_bounds = array<i64: 2, 40, 4>}]} {
    %c0 = arith.constant 0 : index
    %c0_0 = arith.constant 0 : index
    %c0_1 = arith.constant 0 : index
    %0 = vector.load %arg1[%c0, %c0_0, %c0_1] : memref<2x16x4xf32, #tpu.memory_space<vmem>>, vector<2x16x4xf32>
    %c0_2 = arith.constant 0 : index
    %c0_3 = arith.constant 0 : index
    %c0_4 = arith.constant 0 : index
    %1 = vector.load %arg13[%c0_2, %c0_3, %c0_4] : memref<2x40x4xf32, #tpu.memory_space<vmem>>, vector<2x16x4xf32>
    tpu.vector_store %arg13[%c0_2, %c0_3, %c0_4], %0 {strides = array<i32>} : memref<2x40x4xf32, #tpu.memory_space<vmem>>, vector<2x16x4xf32>,
    %c0_5 = arith.constant 0 : index
    %c0_6 = arith.constant 0 : index
    %c0_7 = arith.constant 0 : index
    %2 = vector.load %arg3[%c0_5, %c0_6, %c0_7] : memref<4x16x4xf32, #tpu.memory_space<vmem>>, vector<4x16x4xf32>
    %c0_8 = arith.constant 0 : index
    %c0_9 = arith.constant 0 : index
    %3 = vector.load %arg4[%c0_8, %c0_9] : memref<16x16xbf16, #tpu.memory_space<vmem>>, vector<16x16xbf16>
    %c0_10 = arith.constant 0 : index
    %c0_11 = arith.constant 0 : index
    %4 = vector.load %arg5[%c0_10, %c0_11] : memref<16x1xf32, #tpu.memory_space<vmem>>, vector<16x1xf32>
    %c0_12 = arith.constant 0 : index
    %c0_13 = arith.constant 0 : index
    %c0_14 = arith.constant 0 : index
    %5 = vector.load %arg6[%c0_12, %c0_13, %c0_14] : memref<2x4x4xbf16, #tpu.memory_space<vmem>>, vector<2x4x4xbf16>
    %c0_15 = arith.constant 0 : index
    %c0_16 = arith.constant 0 : index
    %c0_17 = arith.constant 0 : index
    %6 = vector.load %arg7[%c0_15, %c0_16, %c0_17] : memref<2x1x4xf32, #tpu.memory_space<vmem>>, vector<2x1x4xf32>
    %7 = vector.extract_strided_slice %2 {offsets = [0, 0, 0], sizes = [1, 16, 4], strides = [1, 1, 1]} : vector<4x16x4xf32> to vector<1x16x4xf32>
    %8 = vector.shape_cast %7 : vector<1x16x4xf32> to vector<16x4xf32>
    %9 = vector.extract_strided_slice %2 {offsets = [1, 0, 0], sizes = [1, 16, 4], strides = [1, 1, 1]} : vector<4x16x4xf32> to vector<1x16x4xf32>
    %10 = vector.shape_cast %9 : vector<1x16x4xf32> to vector<16x4xf32>
    %cst = arith.constant dense<0.000000e+00> : vector<2x16xf32>
    %11 = vector.multi_reduction <add>, %0, %cst [2] : vector<2x16x4xf32> to vector<2x16xf32>
    %12 = vector.shape_cast %11 : vector<2x16xf32> to vector<2x16x1xf32>
    %cst_18 = arith.constant dense<0.000000e+00> : vector<2x1xf32>
    %13 = vector.multi_reduction <add>, %12, %cst_18 [1] : vector<2x16x1xf32> to vector<2x1xf32>
    %14 = vector.shape_cast %13 : vector<2x1xf32> to vector<2x1x1xf32>
    %cst_19 = arith.constant 1.562500e-02 : f32
    %15 = vector.broadcast %cst_19 : f32 to vector<2x1x1xf32>
    %16 = arith.mulf %14, %15 : vector<2x1x1xf32>
    %17 = vector.broadcast %16 : vector<2x1x1xf32> to vector<2x16x4xf32>
    %18 = arith.subf %0, %17 : vector<2x16x4xf32>
    %19 = arith.mulf %18, %18 : vector<2x16x4xf32>
    %cst_20 = arith.constant dense<0.000000e+00> : vector<2x16xf32>
    %20 = vector.multi_reduction <add>, %19, %cst_20 [2] : vector<2x16x4xf32> to vector<2x16xf32>
    %21 = vector.shape_cast %20 : vector<2x16xf32> to vector<2x16x1xf32>
    %cst_21 = arith.constant dense<0.000000e+00> : vector<2x1xf32>
    %22 = vector.multi_reduction <add>, %21, %cst_21 [1] : vector<2x16x1xf32> to vector<2x1xf32>
    %23 = vector.shape_cast %22 : vector<2x1xf32> to vector<2x1x1xf32>
    %cst_22 = arith.constant 1.562500e-02 : f32
    %24 = vector.broadcast %cst_22 : f32 to vector<2x1x1xf32>
    %25 = arith.mulf %23, %24 : vector<2x1x1xf32>
    %cst_23 = arith.constant 9.99999974E-6 : f32
    %26 = vector.broadcast %cst_23 : f32 to vector<2x1x1xf32>
    %27 = arith.addf %25, %26 : vector<2x1x1xf32>
    %28 = math.rsqrt %27 : vector<2x1x1xf32>
    %29 = vector.broadcast %28 : vector<2x1x1xf32> to vector<2x16x4xf32>
    %30 = arith.mulf %18, %29 : vector<2x16x4xf32>
    %31 = vector.shape_cast %8 : vector<16x4xf32> to vector<1x16x4xf32>
    %32 = vector.broadcast %31 : vector<1x16x4xf32> to vector<2x16x4xf32>
    %33 = arith.mulf %30, %32 : vector<2x16x4xf32>
    %34 = vector.shape_cast %10 : vector<16x4xf32> to vector<1x16x4xf32>
    %35 = vector.broadcast %34 : vector<1x16x4xf32> to vector<2x16x4xf32>
    %36 = arith.addf %33, %35 : vector<2x16x4xf32>
    %37 = vector.shape_cast %3 : vector<16x16xbf16> to vector<1x16x16xbf16>
    %38 = vector.broadcast %37 : vector<1x16x16xbf16> to vector<2x16x16xbf16>
    %39 = arith.truncf %36 : vector<2x16x4xf32> to vector<2x16x4xbf16>
    "tpu.trace_start"() <{level = 10 : i32, message = "bts,bsc->btc"}> : () -> ()
    %cst_24 = arith.constant dense<0.000000e+00> : vector<2x16x4xf32>
    %40 = tpu.matmul %38, %39, %cst_24 {dimension_numbers = #tpu.dot_dimension_numbers<[2], [1], [1], [2], [0, 0, 0, 1, 1, 2], [0], [0]>} : vector<2x16x16xbf16>, vector<2x16x4xbf16>, vector<2x16x4xf32> -> vector<2x16x4xf32>
    "tpu.trace_stop"() : () -> ()
    %41 = vector.shape_cast %4 : vector<16x1xf32> to vector<1x16x1xf32>
    %42 = vector.broadcast %41 : vector<1x16x1xf32> to vector<2x16x4xf32>
    %43 = arith.addf %40, %42 : vector<2x16x4xf32>
    %44 = arith.addf %43, %0 : vector<2x16x4xf32>
    %45 = vector.extract_strided_slice %2 {offsets = [2, 0, 0], sizes = [1, 16, 4], strides = [1, 1, 1]} : vector<4x16x4xf32> to vector<1x16x4xf32>
    %46 = vector.shape_cast %45 : vector<1x16x4xf32> to vector<16x4xf32>
    %47 = vector.extract_strided_slice %2 {offsets = [3, 0, 0], sizes = [1, 16, 4], strides = [1, 1, 1]} : vector<4x16x4xf32> to vector<1x16x4xf32>
    %48 = vector.shape_cast %47 : vector<1x16x4xf32> to vector<16x4xf32>
    %cst_25 = arith.constant dense<0.000000e+00> : vector<2x16xf32>
    %49 = vector.multi_reduction <add>, %44, %cst_25 [2] : vector<2x16x4xf32> to vector<2x16xf32>
    %50 = vector.shape_cast %49 : vector<2x16xf32> to vector<2x16x1xf32>
    %cst_26 = arith.constant dense<0.000000e+00> : vector<2x1xf32>
    %51 = vector.multi_reduction <add>, %50, %cst_26 [1] : vector<2x16x1xf32> to vector<2x1xf32>
    %52 = vector.shape_cast %51 : vector<2x1xf32> to vector<2x1x1xf32>
    %cst_27 = arith.constant 1.562500e-02 : f32
    %53 = vector.broadcast %cst_27 : f32 to vector<2x1x1xf32>
    %54 = arith.mulf %52, %53 : vector<2x1x1xf32>
    %55 = vector.broadcast %54 : vector<2x1x1xf32> to vector<2x16x4xf32>
    %56 = arith.subf %44, %55 : vector<2x16x4xf32>
    %57 = arith.mulf %56, %56 : vector<2x16x4xf32>
    %cst_28 = arith.constant dense<0.000000e+00> : vector<2x16xf32>
    %58 = vector.multi_reduction <add>, %57, %cst_28 [2] : vector<2x16x4xf32> to vector<2x16xf32>
    %59 = vector.shape_cast %58 : vector<2x16xf32> to vector<2x16x1xf32>
    %cst_29 = arith.constant dense<0.000000e+00> : vector<2x1xf32>
    %60 = vector.multi_reduction <add>, %59, %cst_29 [1] : vector<2x16x1xf32> to vector<2x1xf32>
    %61 = vector.shape_cast %60 : vector<2x1xf32> to vector<2x1x1xf32>
    %cst_30 = arith.constant 1.562500e-02 : f32
    %62 = vector.broadcast %cst_30 : f32 to vector<2x1x1xf32>
    %63 = arith.mulf %61, %62 : vector<2x1x1xf32>
    %cst_31 = arith.constant 9.99999974E-6 : f32
    %64 = vector.broadcast %cst_31 : f32 to vector<2x1x1xf32>
    %65 = arith.addf %63, %64 : vector<2x1x1xf32>
    %66 = math.rsqrt %65 : vector<2x1x1xf32>
    %67 = vector.broadcast %66 : vector<2x1x1xf32> to vector<2x16x4xf32>
    %68 = arith.mulf %56, %67 : vector<2x16x4xf32>
    %69 = vector.shape_cast %46 : vector<16x4xf32> to vector<1x16x4xf32>
    %70 = vector.broadcast %69 : vector<1x16x4xf32> to vector<2x16x4xf32>
    %71 = arith.mulf %68, %70 : vector<2x16x4xf32>
    %72 = vector.shape_cast %48 : vector<16x4xf32> to vector<1x16x4xf32>
    %73 = vector.broadcast %72 : vector<1x16x4xf32> to vector<2x16x4xf32>
    %74 = arith.addf %71, %73 : vector<2x16x4xf32>
    %75 = vector.shape_cast %74 : vector<2x16x4xf32> to vector<32x4xf32>
    %76 = arith.truncf %75 : vector<32x4xf32> to vector<32x4xbf16>
    %77 = vector.extract_strided_slice %5 {offsets = [0, 0, 0], sizes = [1, 4, 4], strides = [1, 1, 1]} : vector<2x4x4xbf16> to vector<1x4x4xbf16>
    %78 = vector.shape_cast %77 : vector<1x4x4xbf16> to vector<4x4xbf16>
    %cst_32 = arith.constant dense<0.000000e+00> : vector<32x4xf32>
    %79 = tpu.matmul %76, %78, %cst_32 {dimension_numbers = #tpu.dot_dimension_numbers<[1], [0], [0], [1], [0, 0, 1, 1], [], []>} : vector<32x4xbf16>, vector<4x4xbf16>, vector<32x4xf32> -> vector<32x4xf32>
    %80 = vector.extract_strided_slice %6 {offsets = [0, 0, 0], sizes = [1, 1, 4], strides = [1, 1, 1]} : vector<2x1x4xf32> to vector<1x1x4xf32>
    %81 = vector.shape_cast %80 : vector<1x1x4xf32> to vector<1x4xf32>
    %82 = vector.broadcast %81 : vector<1x4xf32> to vector<32x4xf32>
    %83 = arith.addf %79, %82 : vector<32x4xf32>
    %cst_33 = arith.constant 5.000000e-01 : f32
    %84 = vector.broadcast %cst_33 : f32 to vector<32x4xf32>
    %85 = arith.mulf %84, %83 : vector<32x4xf32>
    %cst_34 = arith.constant 0.707106769 : f32
    %86 = vector.broadcast %cst_34 : f32 to vector<32x4xf32>
    %87 = arith.mulf %83, %86 : vector<32x4xf32>
    %cst_35 = arith.constant 0.000000e+00 : f32
    %88 = vector.broadcast %cst_35 : f32 to vector<32x4xf32>
    %89 = arith.cmpf oge, %87, %88 : vector<32x4xf32>
    %cst_36 = arith.constant 1.000000e+00 : f32
    %cst_37 = arith.constant -1.000000e+00 : f32
    %90 = vector.broadcast %cst_36 : f32 to vector<32x4xf32>
    %91 = vector.broadcast %cst_37 : f32 to vector<32x4xf32>
    %92 = arith.select %89, %90, %91 : vector<32x4xi1>, vector<32x4xf32>
    %93 = math.absf %87 : vector<32x4xf32>
    %cst_38 = arith.constant 0.327591091 : f32
    %94 = vector.broadcast %cst_38 : f32 to vector<32x4xf32>
    %95 = arith.mulf %94, %93 : vector<32x4xf32>
    %cst_39 = arith.constant 1.000000e+00 : f32
    %96 = vector.broadcast %cst_39 : f32 to vector<32x4xf32>
    %97 = arith.addf %96, %95 : vector<32x4xf32>
    %98 = tpu.reciprocal %97 {approx = true} : vector<32x4xf32> -> vector<32x4xf32>
    %cst_40 = arith.constant 1.06140542 : f32
    %99 = vector.broadcast %cst_40 : f32 to vector<32x4xf32>
    %100 = arith.mulf %99, %98 : vector<32x4xf32>
    %cst_41 = arith.constant -1.45315206 : f32
    %101 = vector.broadcast %cst_41 : f32 to vector<32x4xf32>
    %102 = arith.addf %100, %101 : vector<32x4xf32>
    %103 = arith.mulf %102, %98 : vector<32x4xf32>
    %cst_42 = arith.constant 1.42141378 : f32
    %104 = vector.broadcast %cst_42 : f32 to vector<32x4xf32>
    %105 = arith.addf %103, %104 : vector<32x4xf32>
    %106 = arith.mulf %105, %98 : vector<32x4xf32>
    %cst_43 = arith.constant -0.284496725 : f32
    %107 = vector.broadcast %cst_43 : f32 to vector<32x4xf32>
    %108 = arith.addf %106, %107 : vector<32x4xf32>
    %109 = arith.mulf %108, %98 : vector<32x4xf32>
    %cst_44 = arith.constant 0.254829586 : f32
    %110 = vector.broadcast %cst_44 : f32 to vector<32x4xf32>
    %111 = arith.addf %109, %110 : vector<32x4xf32>
    %112 = arith.mulf %111, %98 : vector<32x4xf32>
    %cst_45 = arith.constant 0.000000e+00 : f32
    %113 = vector.broadcast %cst_45 : f32 to vector<32x4xf32>
    %114 = arith.subf %113, %93 : vector<32x4xf32>
    %115 = arith.mulf %114, %93 : vector<32x4xf32>
    %116 = math.exp %115 : vector<32x4xf32>
    %117 = arith.mulf %112, %116 : vector<32x4xf32>
    %cst_46 = arith.constant 1.000000e+00 : f32
    %118 = vector.broadcast %cst_46 : f32 to vector<32x4xf32>
    %119 = arith.subf %118, %117 : vector<32x4xf32>
    %120 = arith.mulf %92, %119 : vector<32x4xf32>
    %cst_47 = arith.constant 1.000000e+00 : f32
    %121 = vector.broadcast %cst_47 : f32 to vector<32x4xf32>
    %122 = arith.addf %121, %120 : vector<32x4xf32>
    %123 = arith.mulf %85, %122 : vector<32x4xf32>
    %124 = arith.truncf %123 : vector<32x4xf32> to vector<32x4xbf16>
    %125 = vector.extract_strided_slice %5 {offsets = [1, 0, 0], sizes = [1, 4, 4], strides = [1, 1, 1]} : vector<2x4x4xbf16> to vector<1x4x4xbf16>
    %126 = vector.shape_cast %125 : vector<1x4x4xbf16> to vector<4x4xbf16>
    %cst_48 = arith.constant dense<0.000000e+00> : vector<32x4xf32>
    %127 = tpu.matmul %124, %126, %cst_48 {dimension_numbers = #tpu.dot_dimension_numbers<[1], [0], [0], [1], [0, 0, 1, 1], [], []>} : vector<32x4xbf16>, vector<4x4xbf16>, vector<32x4xf32> -> vector<32x4xf32>
    %128 = vector.extract_strided_slice %6 {offsets = [1, 0, 0], sizes = [1, 1, 4], strides = [1, 1, 1]} : vector<2x1x4xf32> to vector<1x1x4xf32>
    %129 = vector.shape_cast %128 : vector<1x1x4xf32> to vector<1x4xf32>
    %130 = vector.broadcast %129 : vector<1x4xf32> to vector<32x4xf32>
    %131 = arith.addf %127, %130 : vector<32x4xf32>
    %132 = arith.addf %75, %131 : vector<32x4xf32>
    %133 = vector.shape_cast %132 : vector<32x4xf32> to vector<2x16x4xf32>
    %c0_49 = arith.constant 0 : index
    %c16 = arith.constant 16 : index
    %c0_50 = arith.constant 0 : index
    %134 = vector.load %arg13[%c0_49, %c16, %c0_50] : memref<2x40x4xf32, #tpu.memory_space<vmem>>, vector<2x16x4xf32>
    tpu.vector_store %arg13[%c0_49, %c16, %c0_50], %133 {strides = array<i32>} : memref<2x40x4xf32, #tpu.memory_space<vmem>>, vector<2x16x4xf32>,
    %c0_51 = arith.constant 0 : index
    %c0_52 = arith.constant 0 : index
    %c0_53 = arith.constant 0 : index
    %135 = vector.load %arg2[%c0_51, %c0_52, %c0_53] : memref<2x8x4xf32, #tpu.memory_space<vmem>>, vector<2x8x4xf32>
    %c0_54 = arith.constant 0 : index
    %c0_55 = arith.constant 0 : index
    %c0_56 = arith.constant 0 : index
    %136 = vector.load %arg8[%c0_54, %c0_55, %c0_56] : memref<4x8x4xf32, #tpu.memory_space<vmem>>, vector<4x8x4xf32>
    %c0_57 = arith.constant 0 : index
    %c0_58 = arith.constant 0 : index
    %137 = vector.load %arg9[%c0_57, %c0_58] : memref<8x8xbf16, #tpu.memory_space<vmem>>, vector<8x8xbf16>
    %c0_59 = arith.constant 0 : index
    %c0_60 = arith.constant 0 : index
    %138 = vector.load %arg10[%c0_59, %c0_60] : memref<8x1xf32, #tpu.memory_space<vmem>>, vector<8x1xf32>
    %c0_61 = arith.constant 0 : index
    %c0_62 = arith.constant 0 : index
    %c0_63 = arith.constant 0 : index
    %139 = vector.load %arg11[%c0_61, %c0_62, %c0_63] : memref<2x4x4xbf16, #tpu.memory_space<vmem>>, vector<2x4x4xbf16>
    %c0_64 = arith.constant 0 : index
    %c0_65 = arith.constant 0 : index
    %c0_66 = arith.constant 0 : index
    %140 = vector.load %arg12[%c0_64, %c0_65, %c0_66] : memref<2x1x4xf32, #tpu.memory_space<vmem>>, vector<2x1x4xf32>
    %141 = vector.extract_strided_slice %136 {offsets = [0, 0, 0], sizes = [1, 8, 4], strides = [1, 1, 1]} : vector<4x8x4xf32> to vector<1x8x4xf32>
    %142 = vector.shape_cast %141 : vector<1x8x4xf32> to vector<8x4xf32>
    %143 = vector.extract_strided_slice %136 {offsets = [1, 0, 0], sizes = [1, 8, 4], strides = [1, 1, 1]} : vector<4x8x4xf32> to vector<1x8x4xf32>
    %144 = vector.shape_cast %143 : vector<1x8x4xf32> to vector<8x4xf32>
    %cst_67 = arith.constant dense<0.000000e+00> : vector<2x8xf32>
    %145 = vector.multi_reduction <add>, %135, %cst_67 [2] : vector<2x8x4xf32> to vector<2x8xf32>
    %146 = vector.shape_cast %145 : vector<2x8xf32> to vector<2x8x1xf32>
    %cst_68 = arith.constant dense<0.000000e+00> : vector<2x1xf32>
    %147 = vector.multi_reduction <add>, %146, %cst_68 [1] : vector<2x8x1xf32> to vector<2x1xf32>
    %148 = vector.shape_cast %147 : vector<2x1xf32> to vector<2x1x1xf32>
    %cst_69 = arith.constant 3.125000e-02 : f32
    %149 = vector.broadcast %cst_69 : f32 to vector<2x1x1xf32>
    %150 = arith.mulf %148, %149 : vector<2x1x1xf32>
    %151 = vector.broadcast %150 : vector<2x1x1xf32> to vector<2x8x4xf32>
    %152 = arith.subf %135, %151 : vector<2x8x4xf32>
    %153 = arith.mulf %152, %152 : vector<2x8x4xf32>
    %cst_70 = arith.constant dense<0.000000e+00> : vector<2x8xf32>
    %154 = vector.multi_reduction <add>, %153, %cst_70 [2] : vector<2x8x4xf32> to vector<2x8xf32>
    %155 = vector.shape_cast %154 : vector<2x8xf32> to vector<2x8x1xf32>
    %cst_71 = arith.constant dense<0.000000e+00> : vector<2x1xf32>
    %156 = vector.multi_reduction <add>, %155, %cst_71 [1] : vector<2x8x1xf32> to vector<2x1xf32>
    %157 = vector.shape_cast %156 : vector<2x1xf32> to vector<2x1x1xf32>
    %cst_72 = arith.constant 3.125000e-02 : f32
    %158 = vector.broadcast %cst_72 : f32 to vector<2x1x1xf32>
    %159 = arith.mulf %157, %158 : vector<2x1x1xf32>
    %cst_73 = arith.constant 9.99999974E-6 : f32
    %160 = vector.broadcast %cst_73 : f32 to vector<2x1x1xf32>
    %161 = arith.addf %159, %160 : vector<2x1x1xf32>
    %162 = math.rsqrt %161 : vector<2x1x1xf32>
    %163 = vector.broadcast %162 : vector<2x1x1xf32> to vector<2x8x4xf32>
    %164 = arith.mulf %152, %163 : vector<2x8x4xf32>
    %165 = vector.shape_cast %142 : vector<8x4xf32> to vector<1x8x4xf32>
    %166 = vector.broadcast %165 : vector<1x8x4xf32> to vector<2x8x4xf32>
    %167 = arith.mulf %164, %166 : vector<2x8x4xf32>
    %168 = vector.shape_cast %144 : vector<8x4xf32> to vector<1x8x4xf32>
    %169 = vector.broadcast %168 : vector<1x8x4xf32> to vector<2x8x4xf32>
    %170 = arith.addf %167, %169 : vector<2x8x4xf32>
    %171 = vector.shape_cast %137 : vector<8x8xbf16> to vector<1x8x8xbf16>
    %172 = vector.broadcast %171 : vector<1x8x8xbf16> to vector<2x8x8xbf16>
    %173 = arith.truncf %170 : vector<2x8x4xf32> to vector<2x8x4xbf16>
    "tpu.trace_start"() <{level = 10 : i32, message = "bts,bsc->btc"}> : () -> ()
    %cst_74 = arith.constant dense<0.000000e+00> : vector<2x8x4xf32>
    %174 = tpu.matmul %172, %173, %cst_74 {dimension_numbers = #tpu.dot_dimension_numbers<[2], [1], [1], [2], [0, 0, 0, 1, 1, 2], [0], [0]>} : vector<2x8x8xbf16>, vector<2x8x4xbf16>, vector<2x8x4xf32> -> vector<2x8x4xf32>
    "tpu.trace_stop"() : () -> ()
    %175 = vector.shape_cast %138 : vector<8x1xf32> to vector<1x8x1xf32>
    %176 = vector.broadcast %175 : vector<1x8x1xf32> to vector<2x8x4xf32>
    %177 = arith.addf %174, %176 : vector<2x8x4xf32>
    %178 = arith.addf %177, %135 : vector<2x8x4xf32>
    %179 = vector.extract_strided_slice %136 {offsets = [2, 0, 0], sizes = [1, 8, 4], strides = [1, 1, 1]} : vector<4x8x4xf32> to vector<1x8x4xf32>
    %180 = vector.shape_cast %179 : vector<1x8x4xf32> to vector<8x4xf32>
    %181 = vector.extract_strided_slice %136 {offsets = [3, 0, 0], sizes = [1, 8, 4], strides = [1, 1, 1]} : vector<4x8x4xf32> to vector<1x8x4xf32>
    %182 = vector.shape_cast %181 : vector<1x8x4xf32> to vector<8x4xf32>
    %cst_75 = arith.constant dense<0.000000e+00> : vector<2x8xf32>
    %183 = vector.multi_reduction <add>, %178, %cst_75 [2] : vector<2x8x4xf32> to vector<2x8xf32>
    %184 = vector.shape_cast %183 : vector<2x8xf32> to vector<2x8x1xf32>
    %cst_76 = arith.constant dense<0.000000e+00> : vector<2x1xf32>
    %185 = vector.multi_reduction <add>, %184, %cst_76 [1] : vector<2x8x1xf32> to vector<2x1xf32>
    %186 = vector.shape_cast %185 : vector<2x1xf32> to vector<2x1x1xf32>
    %cst_77 = arith.constant 3.125000e-02 : f32
    %187 = vector.broadcast %cst_77 : f32 to vector<2x1x1xf32>
    %188 = arith.mulf %186, %187 : vector<2x1x1xf32>
    %189 = vector.broadcast %188 : vector<2x1x1xf32> to vector<2x8x4xf32>
    %190 = arith.subf %178, %189 : vector<2x8x4xf32>
    %191 = arith.mulf %190, %190 : vector<2x8x4xf32>
    %cst_78 = arith.constant dense<0.000000e+00> : vector<2x8xf32>
    %192 = vector.multi_reduction <add>, %191, %cst_78 [2] : vector<2x8x4xf32> to vector<2x8xf32>
    %193 = vector.shape_cast %192 : vector<2x8xf32> to vector<2x8x1xf32>
    %cst_79 = arith.constant dense<0.000000e+00> : vector<2x1xf32>
    %194 = vector.multi_reduction <add>, %193, %cst_79 [1] : vector<2x8x1xf32> to vector<2x1xf32>
    %195 = vector.shape_cast %194 : vector<2x1xf32> to vector<2x1x1xf32>
    %cst_80 = arith.constant 3.125000e-02 : f32
    %196 = vector.broadcast %cst_80 : f32 to vector<2x1x1xf32>
    %197 = arith.mulf %195, %196 : vector<2x1x1xf32>
    %cst_81 = arith.constant 9.99999974E-6 : f32
    %198 = vector.broadcast %cst_81 : f32 to vector<2x1x1xf32>
    %199 = arith.addf %197, %198 : vector<2x1x1xf32>
    %200 = math.rsqrt %199 : vector<2x1x1xf32>
    %201 = vector.broadcast %200 : vector<2x1x1xf32> to vector<2x8x4xf32>
    %202 = arith.mulf %190, %201 : vector<2x8x4xf32>
    %203 = vector.shape_cast %180 : vector<8x4xf32> to vector<1x8x4xf32>
    %204 = vector.broadcast %203 : vector<1x8x4xf32> to vector<2x8x4xf32>
    %205 = arith.mulf %202, %204 : vector<2x8x4xf32>
    %206 = vector.shape_cast %182 : vector<8x4xf32> to vector<1x8x4xf32>
    %207 = vector.broadcast %206 : vector<1x8x4xf32> to vector<2x8x4xf32>
    %208 = arith.addf %205, %207 : vector<2x8x4xf32>
    %209 = vector.shape_cast %208 : vector<2x8x4xf32> to vector<16x4xf32>
    %210 = arith.truncf %209 : vector<16x4xf32> to vector<16x4xbf16>
    %211 = vector.extract_strided_slice %139 {offsets = [0, 0, 0], sizes = [1, 4, 4], strides = [1, 1, 1]} : vector<2x4x4xbf16> to vector<1x4x4xbf16>
    %212 = vector.shape_cast %211 : vector<1x4x4xbf16> to vector<4x4xbf16>
    %cst_82 = arith.constant dense<0.000000e+00> : vector<16x4xf32>
    %213 = tpu.matmul %210, %212, %cst_82 {dimension_numbers = #tpu.dot_dimension_numbers<[1], [0], [0], [1], [0, 0, 1, 1], [], []>} : vector<16x4xbf16>, vector<4x4xbf16>, vector<16x4xf32> -> vector<16x4xf32>
    %214 = vector.extract_strided_slice %140 {offsets = [0, 0, 0], sizes = [1, 1, 4], strides = [1, 1, 1]} : vector<2x1x4xf32> to vector<1x1x4xf32>
    %215 = vector.shape_cast %214 : vector<1x1x4xf32> to vector<1x4xf32>
    %216 = vector.broadcast %215 : vector<1x4xf32> to vector<16x4xf32>
    %217 = arith.addf %213, %216 : vector<16x4xf32>
    %cst_83 = arith.constant 5.000000e-01 : f32
    %218 = vector.broadcast %cst_83 : f32 to vector<16x4xf32>
    %219 = arith.mulf %218, %217 : vector<16x4xf32>
    %cst_84 = arith.constant 0.707106769 : f32
    %220 = vector.broadcast %cst_84 : f32 to vector<16x4xf32>
    %221 = arith.mulf %217, %220 : vector<16x4xf32>
    %cst_85 = arith.constant 0.000000e+00 : f32
    %222 = vector.broadcast %cst_85 : f32 to vector<16x4xf32>
    %223 = arith.cmpf oge, %221, %222 : vector<16x4xf32>
    %cst_86 = arith.constant 1.000000e+00 : f32
    %cst_87 = arith.constant -1.000000e+00 : f32
    %224 = vector.broadcast %cst_86 : f32 to vector<16x4xf32>
    %225 = vector.broadcast %cst_87 : f32 to vector<16x4xf32>
    %226 = arith.select %223, %224, %225 : vector<16x4xi1>, vector<16x4xf32>
    %227 = math.absf %221 : vector<16x4xf32>
    %cst_88 = arith.constant 0.327591091 : f32
    %228 = vector.broadcast %cst_88 : f32 to vector<16x4xf32>
    %229 = arith.mulf %228, %227 : vector<16x4xf32>
    %cst_89 = arith.constant 1.000000e+00 : f32
    %230 = vector.broadcast %cst_89 : f32 to vector<16x4xf32>
    %231 = arith.addf %230, %229 : vector<16x4xf32>
    %232 = tpu.reciprocal %231 {approx = true} : vector<16x4xf32> -> vector<16x4xf32>
    %cst_90 = arith.constant 1.06140542 : f32
    %233 = vector.broadcast %cst_90 : f32 to vector<16x4xf32>
    %234 = arith.mulf %233, %232 : vector<16x4xf32>
    %cst_91 = arith.constant -1.45315206 : f32
    %235 = vector.broadcast %cst_91 : f32 to vector<16x4xf32>
    %236 = arith.addf %234, %235 : vector<16x4xf32>
    %237 = arith.mulf %236, %232 : vector<16x4xf32>
    %cst_92 = arith.constant 1.42141378 : f32
    %238 = vector.broadcast %cst_92 : f32 to vector<16x4xf32>
    %239 = arith.addf %237, %238 : vector<16x4xf32>
    %240 = arith.mulf %239, %232 : vector<16x4xf32>
    %cst_93 = arith.constant -0.284496725 : f32
    %241 = vector.broadcast %cst_93 : f32 to vector<16x4xf32>
    %242 = arith.addf %240, %241 : vector<16x4xf32>
    %243 = arith.mulf %242, %232 : vector<16x4xf32>
    %cst_94 = arith.constant 0.254829586 : f32
    %244 = vector.broadcast %cst_94 : f32 to vector<16x4xf32>
    %245 = arith.addf %243, %244 : vector<16x4xf32>
    %246 = arith.mulf %245, %232 : vector<16x4xf32>
    %cst_95 = arith.constant 0.000000e+00 : f32
    %247 = vector.broadcast %cst_95 : f32 to vector<16x4xf32>
    %248 = arith.subf %247, %227 : vector<16x4xf32>
    %249 = arith.mulf %248, %227 : vector<16x4xf32>
    %250 = math.exp %249 : vector<16x4xf32>
    %251 = arith.mulf %246, %250 : vector<16x4xf32>
    %cst_96 = arith.constant 1.000000e+00 : f32
    %252 = vector.broadcast %cst_96 : f32 to vector<16x4xf32>
    %253 = arith.subf %252, %251 : vector<16x4xf32>
    %254 = arith.mulf %226, %253 : vector<16x4xf32>
    %cst_97 = arith.constant 1.000000e+00 : f32
    %255 = vector.broadcast %cst_97 : f32 to vector<16x4xf32>
    %256 = arith.addf %255, %254 : vector<16x4xf32>
    %257 = arith.mulf %219, %256 : vector<16x4xf32>
    %258 = arith.truncf %257 : vector<16x4xf32> to vector<16x4xbf16>
    %259 = vector.extract_strided_slice %139 {offsets = [1, 0, 0], sizes = [1, 4, 4], strides = [1, 1, 1]} : vector<2x4x4xbf16> to vector<1x4x4xbf16>
    %260 = vector.shape_cast %259 : vector<1x4x4xbf16> to vector<4x4xbf16>
    %cst_98 = arith.constant dense<0.000000e+00> : vector<16x4xf32>
    %261 = tpu.matmul %258, %260, %cst_98 {dimension_numbers = #tpu.dot_dimension_numbers<[1], [0], [0], [1], [0, 0, 1, 1], [], []>} : vector<16x4xbf16>, vector<4x4xbf16>, vector<16x4xf32> -> vector<16x4xf32>
    %262 = vector.extract_strided_slice %140 {offsets = [1, 0, 0], sizes = [1, 1, 4], strides = [1, 1, 1]} : vector<2x1x4xf32> to vector<1x1x4xf32>
    %263 = vector.shape_cast %262 : vector<1x1x4xf32> to vector<1x4xf32>
    %264 = vector.broadcast %263 : vector<1x4xf32> to vector<16x4xf32>
    %265 = arith.addf %261, %264 : vector<16x4xf32>
    %266 = arith.addf %209, %265 : vector<16x4xf32>
    %267 = vector.shape_cast %266 : vector<16x4xf32> to vector<2x8x4xf32>
    %c0_99 = arith.constant 0 : index
    %c32 = arith.constant 32 : index
    %c0_100 = arith.constant 0 : index
    %268 = vector.load %arg13[%c0_99, %c32, %c0_100] : memref<2x40x4xf32, #tpu.memory_space<vmem>>, vector<2x8x4xf32>
    tpu.vector_store %arg13[%c0_99, %c32, %c0_100], %267 {strides = array<i32>} : memref<2x40x4xf32, #tpu.memory_space<vmem>>, vector<2x8x4xf32>,
    return
  }
  func.func @transform_0(%arg0: i32) -> (i32, i32, i32) {
    %c0_i32 = arith.constant 0 : i32
    %c0_i32_0 = arith.constant 0 : i32
    %c0_i32_1 = arith.constant 0 : i32
    return %arg0, %c0_i32, %c0_i32_0 : i32, i32, i32
  }
  func.func @transform_1(%arg0: i32) -> (i32, i32, i32) {
    %c0_i32 = arith.constant 0 : i32
    %c0_i32_0 = arith.constant 0 : i32
    %c0_i32_1 = arith.constant 0 : i32
    return %arg0, %c0_i32, %c0_i32_0 : i32, i32, i32
  }
  func.func @transform_2(%arg0: i32) -> (i32, i32, i32) {
    %c0_i32 = arith.constant 0 : i32
    %c0_i32_0 = arith.constant 0 : i32
    %c0_i32_1 = arith.constant 0 : i32
    %c0_i32_2 = arith.constant 0 : i32
    return %c0_i32, %c0_i32_0, %c0_i32_1 : i32, i32, i32
  }
  func.func @transform_3(%arg0: i32) -> (i32, i32) {
    %c0_i32 = arith.constant 0 : i32
    %c0_i32_0 = arith.constant 0 : i32
    %c0_i32_1 = arith.constant 0 : i32
    return %c0_i32, %c0_i32_0 : i32, i32
  }
  func.func @transform_4(%arg0: i32) -> (i32, i32) {
    %c0_i32 = arith.constant 0 : i32
    %c0_i32_0 = arith.constant 0 : i32
    %c0_i32_1 = arith.constant 0 : i32
    return %c0_i32, %c0_i32_0 : i32, i32
  }
  func.func @transform_5(%arg0: i32) -> (i32, i32, i32) {
    %c0_i32 = arith.constant 0 : i32
    %c0_i32_0 = arith.constant 0 : i32
    %c0_i32_1 = arith.constant 0 : i32
    %c0_i32_2 = arith.constant 0 : i32
    return %c0_i32, %c0_i32_0, %c0_i32_1 : i32, i32, i32
  }
  func.func @transform_6(%arg0: i32) -> (i32, i32, i32) {
    %c0_i32 = arith.constant 0 : i32
    %c0_i32_0 = arith.constant 0 : i32
    %c0_i32_1 = arith.constant 0 : i32
    %c0_i32_2 = arith.constant 0 : i32
    return %c0_i32, %c0_i32_0, %c0_i32_1 : i32, i32, i32
  }
  func.func @transform_7(%arg0: i32) -> (i32, i32, i32) {
    %c0_i32 = arith.constant 0 : i32
    %c0_i32_0 = arith.constant 0 : i32
    %c0_i32_1 = arith.constant 0 : i32
    %c0_i32_2 = arith.constant 0 : i32
    return %c0_i32, %c0_i32_0, %c0_i32_1 : i32, i32, i32
  }
  func.func @transform_8(%arg0: i32) -> (i32, i32) {
    %c0_i32 = arith.constant 0 : i32
    %c0_i32_0 = arith.constant 0 : i32
    %c0_i32_1 = arith.constant 0 : i32
    return %c0_i32, %c0_i32_0 : i32, i32
  }
  func.func @transform_9(%arg0: i32) -> (i32, i32) {
    %c0_i32 = arith.constant 0 : i32
    %c0_i32_0 = arith.constant 0 : i32
    %c0_i32_1 = arith.constant 0 : i32
    return %c0_i32, %c0_i32_0 : i32, i32
  }
  func.func @transform_10(%arg0: i32) -> (i32, i32, i32) {
    %c0_i32 = arith.constant 0 : i32
    %c0_i32_0 = arith.constant 0 : i32
    %c0_i32_1 = arith.constant 0 : i32
    %c0_i32_2 = arith.constant 0 : i32
    return %c0_i32, %c0_i32_0, %c0_i32_1 : i32, i32, i32
  }
  func.func @transform_11(%arg0: i32) -> (i32, i32, i32) {
    %c0_i32 = arith.constant 0 : i32
    %c0_i32_0 = arith.constant 0 : i32
    %c0_i32_1 = arith.constant 0 : i32
    %c0_i32_2 = arith.constant 0 : i32
    return %c0_i32, %c0_i32_0, %c0_i32_1 : i32, i32, i32
  }
  func.func @transform_12(%arg0: i32) -> (i32, i32, i32) {
    %c0_i32 = arith.constant 0 : i32
    %c0_i32_0 = arith.constant 0 : i32
    %c0_i32_1 = arith.constant 0 : i32
    return %arg0, %c0_i32, %c0_i32_0 : i32, i32, i32
  }
}

</mosaic_0001>

<bundles_post_ra>
// kernel: mult_time_2d_mixer.1
= control target key start
LH: loop header
LB: loop body
LE: loop exit
PB: predicated region body
PF: predicated region fallthrough
CT: control target
= control target key end

     0   :  { %vm46_vm0 = vcmask 31744   ;;  %vm604_vm13 = vcmask 1043456   ;;  %vm190_vm14 = vcmask 130048   ;;  %vm600_vm15 = vcmask 64512   ;;  %s1355_s0 = inlined_call_operand.vmem [shape: f32[2,16,4], index: 0, kind: input, shape index: {}]   ;;  %s1356_s1 = inlined_call_operand.vmem [shape: f32[2,8,4], index: 1, kind: input, shape index: {}]   ;;  %s1357_s12 = inlined_call_operand.vmem [shape: f32[2,40,4], index: 12, kind: output, shape index: {}]   ;;  %s1358_s4 = inlined_call_operand.vmem [shape: f32[16,1], index: 4, kind: input, shape index: {}]   ;;  %s1359_s2 = inlined_call_operand.vmem [shape: f32[4,16,4], index: 2, kind: input, shape index: {}]   ;;  %s1360_s7 = inlined_call_operand.vmem [shape: f32[4,8,4], index: 7, kind: input, shape index: {}]   ;;  %s1361_s9 = inlined_call_operand.vmem [shape: f32[8,1], index: 9, kind: input, shape index: {}]   ;;  %s1362_s3 = inlined_call_operand.vmem [shape: bf16[16,16], index: 3, kind: input, shape index: {}]   ;;  %s1363_s8 = inlined_call_operand.vmem [shape: bf16[8,8], index: 8, kind: input, shape index: {}]   ;;  %s1364_s6 = inlined_call_operand.vmem [shape: f32[2,1,4], index: 6, kind: input, shape index: {}]   ;;  %s1365_s5 = inlined_call_operand.vmem [shape: bf16[2,4,4], index: 5, kind: input, shape index: {}]   ;;  %s1366_s10 = inlined_call_operand.vmem [shape: bf16[2,4,4], index: 10, kind: input, shape index: {}]   ;;  %s1367_s11 = inlined_call_operand.vmem [shape: f32[2,1,4], index: 11, kind: input, shape index: {}]  }
   0x1   :  { %v953_v0 = vld [vmem:[%s1355_s0 + $0x10] sm:$0xff]  ;;  %v958_v1 = vld [vmem:[%s1355_s0] sm:$0xff]  ;;  %v982_v5 = vld [vmem:[%s1355_s0 + $0x18] sm:$0xff] }
   0x2   :  { %v73_v2 = vsel %vm46_vm0, %v953_v0, 0.0  ;;  %49 = vst.msk [vmem:[%s1357_s12 + $0x28] sm:$0xff] %vm46_vm0, %v953_v0  ;;  %v67_v3 = vsel %vm46_vm0, %v958_v1, 0.0  ;;  %v972_v4 = vld [vmem:[%s1356_s1] sm:$0xff]  ;;  %v994_v7 = vld [vmem:[%s1355_s0 + $0x8] sm:$0xff]  ;;  %v76_v9 = vsel %vm46_vm0, %v982_v5, 0.0 }
   0x3   :  { %74 = vadd.xlane.f32.xlu1 %v73_v2  ;;  %68 = vadd.xlane.f32.xlu0 %v67_v3  ;;  %47 = vst.msk [vmem:[%s1357_s12] sm:$0xff] %vm46_vm0, %v958_v1  ;;  %v521_v6 = vsel %vm46_vm0, %v972_v4, 0.0  ;;  %v1004_v8 = vld [vmem:[%s1356_s1 + $0x8] sm:$0xff]  ;;  %v70_v10 = vsel %vm46_vm0, %v994_v7, 0.0 }
   0x4   :  { %50 = vst.msk [vmem:[%s1357_s12 + $0x30] sm:$0xff] %vm46_vm0, %v982_v5  ;;  %522 = vadd.xlane.f32.xlu2 %v521_v6  ;;  %v524_v11 = vsel %vm46_vm0, %v1004_v8, 0.0 }
   0x5   :  { %48 = vst.msk [vmem:[%s1357_s12 + $0x8] sm:$0xff] %vm46_vm0, %v994_v7 }
   0xb   :  { %77 = vadd.xlane.f32.xlu1 %v76_v9  ;;  %71 = vadd.xlane.f32.xlu0 %v70_v10 }
   0xc   :  { %525 = vadd.xlane.f32.xlu2 %v524_v11 }
  0x76   :  { %v75_v12 = vpop.xlane.xlu1 %74  ;;  %v69_v13 = vpop.xlane.xlu0 %68 }
  0x77   :  { %v523_v14 = vpop.xlane.xlu2 %522 }
  0x78   :  { %v527_v15 = vrot.slane %v523_v14, 4 }
  0x7a   :  { %v528_v16 = vadd.f32 %v527_v15, %v523_v14 }
  0x7c   :  { %v529_v17 = vrot.slane %v528_v16, 2 }
  0x7e   :  { %v78_v18 = vpop.xlane.xlu1 %77  ;;  %v72_v19 = vpop.xlane.xlu0 %71  ;;  %v530_v23 = vadd.f32 %v529_v17, %v528_v16 }
  0x7f   :  { %v86_v20 = vadd.f32 %v78_v18, %v75_v12  ;;  %v79_v21 = vadd.f32 %v72_v19, %v69_v13  ;;  %v526_v22 = vpop.xlane.xlu2 %525 }
  0x80   :  { %v533_v24 = vrot.slane %v526_v22, 4  ;;  %v531_v30 = vrot.slane %v530_v23, 1 }
  0x81   :  { %v87_v25 = vrot.slane %v86_v20, 4  ;;  %v80_v26 = vrot.slane %v79_v21, 4 }
  0x82   :  { %v534_v27 = vadd.f32 %v533_v24, %v526_v22  ;;  %v532_v37 = vadd.f32 %v531_v30, %v530_v23 }
  0x83   :  { %v88_v28 = vadd.f32 %v87_v25, %v86_v20  ;;  %v81_v29 = vadd.f32 %v80_v26, %v79_v21 }
  0x84   :  { %v535_v31 = vrot.slane %v534_v27, 2  ;;  %v539_v44 = vmul.f32 0.03125, %v532_v37 }
  0x85   :  { %v89_v32 = vrot.slane %v88_v28, 2  ;;  %v82_v33 = vrot.slane %v81_v29, 2 }
  0x86   :  { %v536_v34 = vadd.f32 %v535_v31, %v534_v27  ;;  %v1022_v51 = vsub.f32 %v972_v4, %v539_v44 }
  0x87   :  { %v90_v35 = vadd.f32 %v89_v32, %v88_v28  ;;  %v83_v36 = vadd.f32 %v82_v33, %v81_v29 }
  0x88   :  { %v537_v38 = vrot.slane %v536_v34, 1  ;;  %v543_v61 = vmul.f32 %v1022_v51, %v1022_v51 }
  0x89   :  { %v91_v39 = vrot.slane %v90_v35, 1  ;;  %v84_v40 = vrot.slane %v83_v36, 1 }
  0x8a   :  { %v538_v41 = vadd.f32 %v537_v38, %v536_v34  ;;  %v545_v2 = vsel %vm46_vm0, %v543_v61, 0.0 }
  0x8b   :  { %v92_v42 = vadd.f32 %v91_v39, %v90_v35  ;;  %v85_v43 = vadd.f32 %v84_v40, %v83_v36 }
  0x8c   :  { %v540_v45 = vmul.f32 0.03125, %v538_v41 }
  0x8d   :  { %v94_v46 = vmul.f32 0.015625, %v92_v42  ;;  %v93_v47 = vmul.f32 0.015625, %v85_v43 }
  0x8e   :  { %v1031_v55 = vsub.f32 %v1004_v8, %v540_v45 }
  0x8f   :  { %v1013_v48 = vsub.f32 %v953_v0, %v94_v46  ;;  %v1016_v49 = vsub.f32 %v994_v7, %v93_v47  ;;  %v1019_v50 = vsub.f32 %v958_v1, %v93_v47  ;;  %v1037_v59 = vsub.f32 %v982_v5, %v94_v46 }
  0x90   :  { %v544_v60 = vmul.f32 %v1031_v55, %v1031_v55 }
  0x91   :  { %v101_v52 = vmul.f32 %v1013_v48, %v1013_v48  ;;  %v100_v53 = vmul.f32 %v1016_v49, %v1016_v49  ;;  %v99_v54 = vmul.f32 %v1019_v50, %v1019_v50  ;;  %v102_v62 = vmul.f32 %v1037_v59, %v1037_v59 }
  0x92   :  { %v548_v63 = vsel %vm46_vm0, %v544_v60, 0.0  ;;  %v883_v60 = vmov 0  }
  0x93   :  { %v109_v56 = vsel %vm46_vm0, %v101_v52, 0.0  ;;  %v106_v57 = vsel %vm46_vm0, %v100_v53, 0.0  ;;  %v103_v58 = vsel %vm46_vm0, %v99_v54, 0.0  ;;  %v112_v3 = vsel %vm46_vm0, %v102_v62, 0.0  ;;  %836 = vset.pattern.permute.xlu0 %v883_v60  ;;  %837 = vset.pattern.permute.xlu1 %v883_v60 }
  0x94   :  { %110 = vadd.xlane.f32.xlu2 %v109_v56  ;;  %107 = vadd.xlane.f32.xlu1 %v106_v57  ;;  %v61_v56 = vld [vmem:[%s1358_s4] sm:$0xff] }
  0x95   :  { %104 = vadd.xlane.f32.xlu0 %v103_v58  ;;  %838 = vset.pattern.permute.xlu2 %v883_v60 }
  0x9c   :  { %549 = vadd.xlane.f32.xlu2 %v548_v63  ;;  %546 = vadd.xlane.f32.xlu1 %v545_v2 }
  0x9d   :  { %113 = vadd.xlane.f32.xlu0 %v112_v3 }
  0xb1   :  { %171 = vperm.xlu0 %836, %v61_v56   ;;  %v833_v56 = vld [vmem:[%s1362_s3] sm:$0xff] }
 0x107   :  { %v111_v6 = vpop.xlane.xlu2 %110  ;;  %v108_v9 = vpop.xlane.xlu1 %107 }
 0x108   :  { %v105_v10 = vpop.xlane.xlu0 %104 }
 0x109   :  { %v115_v11 = vadd.f32 %v108_v9, %v105_v10 }
 0x10b   :  { %v116_v12 = vrot.slane %v115_v11, 4 }
 0x10d   :  { %v117_v13 = vadd.f32 %v116_v12, %v115_v11 }
 0x10f   :  { %v118_v14 = vrot.slane %v117_v13, 2  ;;  %v550_v15 = vpop.xlane.xlu2 %549  ;;  %v547_v16 = vpop.xlane.xlu1 %546 }
 0x110   :  { %v557_v17 = vrot.slane %v550_v15, 4  ;;  %v551_v18 = vrot.slane %v547_v16, 4  ;;  %v114_v19 = vpop.xlane.xlu0 %113 }
 0x111   :  { %v119_v20 = vadd.f32 %v118_v14, %v117_v13  ;;  %v122_v21 = vadd.f32 %v114_v19, %v111_v6 }
 0x112   :  { %v558_v22 = vadd.f32 %v557_v17, %v550_v15  ;;  %v552_v23 = vadd.f32 %v551_v18, %v547_v16  ;;  %v51_v15 = vld [vmem:[%s1359_s2] sm:$0xff]  ;;  %v52_v16 = vld [vmem:[%s1359_s2 + $0x8] sm:$0xff] }
 0x113   :  { %v120_v24 = vrot.slane %v119_v20, 1  ;;  %v123_v25 = vrot.slane %v122_v21, 4  ;;  %v62_v18 = vld [vmem:[%s1358_s4 + $0x8] sm:$0xff] }
 0x114   :  { %v559_v26 = vrot.slane %v558_v22, 2  ;;  %v553_v27 = vrot.slane %v552_v23, 2  ;;  %176 = vperm.xlu1 %837, %v62_v18  }
 0x115   :  { %v121_v28 = vadd.f32 %v120_v24, %v119_v20  ;;  %v124_v29 = vadd.f32 %v123_v25, %v122_v21  ;;  %v53_v24 = vld [vmem:[%s1359_s2 + $0x10] sm:$0xff]  ;;  %v54_v25 = vld [vmem:[%s1359_s2 + $0x18] sm:$0xff] }
 0x116   :  { %v560_v30 = vadd.f32 %v559_v26, %v558_v22  ;;  %v554_v31 = vadd.f32 %v553_v27, %v552_v23 }
 0x117   :  { %v129_v32 = vmul.f32 0.015625, %v121_v28  ;;  %v125_v33 = vrot.slane %v124_v29, 2 }
 0x118   :  { %v561_v34 = vrot.slane %v560_v30, 1  ;;  %v555_v35 = vrot.slane %v554_v31, 1 }
 0x119   :  { %v131_v36 = vadd.f32 1e-05, %v129_v32  ;;  %v126_v37 = vadd.f32 %v125_v33, %v124_v29 }
 0x11a   :  { %v562_v38 = vadd.f32 %v561_v34, %v560_v30  ;;  %v556_v39 = vadd.f32 %v555_v35, %v554_v31  ;;  %v511_v34 = vld [vmem:[%s1360_s7] sm:$0xff] }
 0x11b   :  { %843 = vrsqrt.f32 %v131_v36  ;;  %v127_v40 = vrot.slane %v126_v37, 1  ;;  %vm139_vm2 = vweird.f32 %v131_v36 }
 0x11c   :  { %v564_v41 = vmul.f32 0.03125, %v562_v38  ;;  %v563_v42 = vmul.f32 0.03125, %v556_v39 }
 0x11d   :  { %v128_v43 = vadd.f32 %v127_v40, %v126_v37 }
 0x11e   :  { %v566_v44 = vadd.f32 1e-05, %v564_v41  ;;  %v565_v45 = vadd.f32 1e-05, %v563_v42  ;;  %v512_v41 = vld [vmem:[%s1360_s7 + $0x8] sm:$0xff] }
 0x11f   :  { %v130_v46 = vmul.f32 0.015625, %v128_v43 }
 0x120   :  { %845 = vrsqrt.f32 %v566_v44  ;;  %vm573_vm4 = vweird.f32 %v565_v45  ;;  %vm583_vm5 = vweird.f32 %v566_v44 }
 0x121   :  { %v844_v47 = vpop.eup %843  ;;  %847 = vrsqrt.f32 %v565_v45  ;;  %v1048_v52 = vadd.f32 1e-05, %v130_v46 }
 0x122   :  { %v134_v53 = vmul.f32 %v844_v47, %v131_v36  ;;  %vm140_vm1 = vweird.f32 %v844_v47 }
 0x123   :  { %849 = vrsqrt.f32 %v1048_v52  ;;  %vm141_vm3 = vmor %vm139_vm2, %vm140_vm1  ;;  %vm149_vm11 = vweird.f32 %v1048_v52  ;;  %vm341_vm1 = vcmask 1041408  }
 0x124   :  { %v135_v54 = vmul.f32 %v844_v47, %v134_v53 }
 0x126   :  { %v846_v57 = vpop.eup %845  ;;  %v136_v58 = vmul.f32 0.5, %v135_v54 }
 0x127   :  { %v848_v61 = vpop.eup %847  ;;  %v578_v62 = vmul.f32 %v846_v57, %v566_v44  ;;  %vm584_vm6 = vweird.f32 %v846_v57 }
 0x128   :  { %v568_v63 = vmul.f32 %v848_v61, %v565_v45  ;;  %v137_v2 = vsub.f32 1.5, %v136_v58  ;;  %vm574_vm7 = vweird.f32 %v848_v61  ;;  %vm1074_vm8 = vmor %vm583_vm5, %vm584_vm6 }
 0x129   :  { %v850_v3 = vpop.eup %849  ;;  %v579_v6 = vmul.f32 %v846_v57, %v578_v62  ;;  %vm1079_vm9 = vmor %vm573_vm4, %vm574_vm7 }
 0x12a   :  { %v569_v9 = vmul.f32 %v848_v61, %v568_v63  ;;  %v144_v10 = vmul.f32 %v850_v3, %v1048_v52  ;;  %v138_v11 = vmul.f32 %v844_v47, %v137_v2  ;;  %vm150_vm10 = vweird.f32 %v850_v3 }
 0x12b   :  { %v580_v12 = vmul.f32 0.5, %v579_v6  ;;  %vm151_vm12 = vmor %vm149_vm11, %vm150_vm10 }
 0x12c   :  { %v570_v13 = vmul.f32 0.5, %v569_v9  ;;  %v145_v14 = vmul.f32 %v850_v3, %v144_v10  ;;  %v142_v17 = vsel %vm141_vm3, %v844_v47, %v138_v11  ;;  %v516_v47 = vld [vmem:[%s1361_s9] sm:$0xff] }
 0x12d   :  { %v581_v19 = vsub.f32 1.5, %v580_v12  ;;  %v153_v20 = vmul.f32 %v142_v17, %v1019_v50  ;;  %v154_v21 = vmul.f32 %v142_v17, %v1016_v49  ;;  %597 = vperm.xlu2 %838, %v516_v47   ;;  %v515_v11 = vld [vmem:[%s1363_s8] sm:$0xf]  ;;  %v172_v12 = vpop.permute.xlu0 %171 }
 0x12e   :  { %v571_v22 = vsub.f32 1.5, %v570_v13  ;;  %v146_v23 = vmul.f32 0.5, %v145_v14 }
 0x12f   :  { %v157_v50 = vmul.f32 %v153_v20, %v51_v15  ;;  %v158_v27 = vmul.f32 %v154_v21, %v52_v16  ;;  %v582_v28 = vmul.f32 %v846_v57, %v581_v19 }
 0x130   :  { %v572_v29 = vmul.f32 %v848_v61, %v571_v22  ;;  %v147_v30 = vsub.f32 1.5, %v146_v23 }
 0x131   :  { %v161_v31 = vadd.f32 %v157_v50, %v53_v24  ;;  %v162_v32 = vadd.f32 %v158_v27, %v54_v25  ;;  %v586_v33 = vsel %vm1074_vm8, %v846_v57, %v582_v28 }
 0x132   :  { %v576_v35 = vsel %vm1079_vm9, %v848_v61, %v572_v29  ;;  %v148_v36 = vmul.f32 %v850_v3, %v147_v30  ;;  %v588_v37 = vmul.f32 %v586_v33, %v1031_v55 }
 0x133   :  { %v165_v38 = vpack.c.bf16 %v161_v31, %v161_v31  ;;  %v166_v39 = vpack.c.bf16 %v162_v32, %v162_v32  ;;  %v587_v40 = vmul.f32 %v576_v35, %v1022_v51 }
 0x134   :  { %v152_v42 = vsel %vm151_vm12, %v850_v3, %v148_v36  ;;  %v590_v52 = vmul.f32 %v588_v37, %v511_v34 }
 0x135   :  { %v186_v43 = vunpack.c.l.b16 %v165_v38  ;;  %v187_v44 = vunpack.c.l.b16 %v166_v39  ;;  %v589_v45 = vmul.f32 %v587_v40, %v511_v34  ;;  %v155_v46 = vmul.f32 %v152_v42, %v1013_v48 }
 0x136   :  { %v156_v55 = vmul.f32 %v152_v42, %v1037_v59  ;;  %v592_v61 = vadd.f32 %v590_v52, %v512_v41 }
 0x137   :  { %v188_v51 = vpack.c.b16 %v187_v44, %v186_v43  ;;  %v591_v53 = vadd.f32 %v589_v45, %v512_v41  ;;  %v159_v54 = vmul.f32 %v155_v46, %v51_v15 }
 0x138   :  { %v160_v57 = vmul.f32 %v156_v55, %v52_v16  ;;  %v594_v6 = vpack.c.bf16 %v592_v61, %v592_v61 }
 0x139   :  { %201 = vmatpush.bf16.msra.mxu0 %v188_v51  ;;  %v593_v48 = vpack.c.bf16 %v591_v53, %v591_v53  ;;  %v163_v58 = vadd.f32 %v159_v54, %v53_v24 }
 0x13a   :  { %v164_v60 = vadd.f32 %v160_v57, %v54_v25  ;;  %v622_v10 = vsel %vm604_vm13, %v594_v6, 0 }
 0x13b   :  { %v606_v62 = vsel %vm604_vm13, %v593_v48, 0  ;;  %v167_v59 = vpack.c.bf16 %v163_v58, %v163_v58 }
 0x13c   :  { %823 = vmatmul.msk.bf16.vlgmr.msra.gmra.mxu0 %vm190_vm14, %v833_v56  ;;  %v168_v63 = vpack.c.bf16 %v164_v60, %v164_v60 }
 0x13d   :  { %615 = vmatpush.bf16.msrb.mxu0 %v606_v62  ;;  %v210_v2 = vunpack.c.l.b16 %v167_v59 }
 0x13e   :  { %v211_v3 = vunpack.c.l.b16 %v168_v63 }
 0x140   :  { %v212_v9 = vpack.c.b16 %v211_v3, %v210_v2 }
 0x142   :  { %221 = vmatpush.bf16.msra.mxu1 %v212_v9 }
 0x145   :  { %824 = vmatmul.msk.bf16.vlgmr.msra.gmra.mxu1 %vm190_vm14, %v833_v56 }
 0x146   :  { %631 = vmatpush.bf16.msrb.mxu1 %v622_v10 }
 0x14c   :  { %829 = vmatmul.msk.bf16.vlgmr.msrb.gmra.mxu0 %vm600_vm15, %v515_v11 }
 0x155   :  { %830 = vmatmul.msk.bf16.vlgmr.msrb.gmra.mxu1 %vm600_vm15, %v515_v11 }
 0x186   :  { %v177_v17 = vpop.permute.xlu1 %176 }
 0x1b9   :  { %v203_v13 = vpop.f32.mrf.mxu0 }
 0x1ba   :  { %v204_v14 = vadd.f32 %v203_v13, %v172_v12 }
 0x1bc   :  { %v228_v15 = vadd.f32 %v204_v14, %v958_v1  ;;  %v598_v1 = vpop.permute.xlu2 %597 }
 0x1be   :  { %v232_v16 = vsel %vm46_vm0, %v228_v15, 0.0 }
 0x1bf   :  { %233 = vadd.xlane.f32.xlu2 %v232_v16 }
 0x1c1   :  { %v205_v18 = vpop.f32.mrf.mxu0 }
 0x1c2   :  { %v206_v19 = vadd.f32 %v205_v18, %v177_v17  ;;  %v223_v20 = vpop.f32.mrf.mxu1 }
 0x1c3   :  { %v224_v21 = vadd.f32 %v223_v20, %v172_v12 }
 0x1c4   :  { %v229_v22 = vadd.f32 %v206_v19, %v994_v7 }
 0x1c5   :  { %v1115_v23 = vadd.f32 %v224_v21, %v953_v0 }
 0x1c6   :  { %v235_v24 = vsel %vm46_vm0, %v229_v22, 0.0 }
 0x1c7   :  { %236 = vadd.xlane.f32.xlu1 %v235_v24  ;;  %v238_v25 = vsel %vm46_vm0, %v1115_v23, 0.0 }
 0x1c8   :  { %239 = vadd.xlane.f32.xlu0 %v238_v25 }
 0x1c9   :  { %v617_v26 = vpop.f32.mrf.mxu0 }
 0x1ca   :  { %v225_v50 = vpop.f32.mrf.mxu1  ;;  %v618_v27 = vadd.f32 %v617_v26, %v598_v1 }
 0x1cb   :  { %v226_v49 = vadd.f32 %v225_v50, %v177_v17 }
 0x1cc   :  { %v637_v28 = vadd.f32 %v618_v27, %v972_v4 }
 0x1cd   :  { %v231_v29 = vadd.f32 %v226_v49, %v982_v5 }
 0x1ce   :  { %v639_v7 = vsel %vm46_vm0, %v637_v28, 0.0 }
 0x1cf   :  { %640 = vadd.xlane.f32.xlu1 %v639_v7  ;;  %v241_v0 = vsel %vm46_vm0, %v231_v29, 0.0 }
 0x1d0   :  { %242 = vadd.xlane.f32.xlu2 %v241_v0 }
 0x1d1   :  { %v619_v30 = vpop.f32.mrf.mxu0 }
 0x1d2   :  { %v633_v31 = vpop.f32.mrf.mxu1 }
 0x1d3   :  { %v634_v32 = vadd.f32 %v633_v31, %v598_v1 }
 0x1d5   :  { %v638_v33 = vadd.f32 %v634_v32, %v1004_v8 }
 0x1d7   :  { %v642_v34 = vsel %vm46_vm0, %v638_v33, 0.0 }
 0x1d8   :  { %643 = vadd.xlane.f32.xlu2 %v642_v34 }
 0x1da   :  { %v635_v35 = vpop.f32.mrf.mxu1 }
 0x232   :  { %v234_v36 = vpop.xlane.xlu2 %233 }
 0x23a   :  { %v237_v37 = vpop.xlane.xlu1 %236 }
 0x23b   :  { %v244_v4 = vadd.f32 %v237_v37, %v234_v36  ;;  %v240_v42 = vpop.xlane.xlu0 %239 }
 0x23d   :  { %v245_v38 = vrot.slane %v244_v4, 4 }
 0x23f   :  { %v246_v5 = vadd.f32 %v245_v38, %v244_v4 }
 0x241   :  { %v247_v39 = vrot.slane %v246_v5, 2 }
 0x242   :  { %v641_v40 = vpop.xlane.xlu1 %640 }
 0x243   :  { %v248_v41 = vadd.f32 %v247_v39, %v246_v5  ;;  %v645_v43 = vrot.slane %v641_v40, 4  ;;  %v243_v44 = vpop.xlane.xlu2 %242 }
 0x244   :  { %v251_v45 = vadd.f32 %v243_v44, %v240_v42 }
 0x245   :  { %v249_v46 = vrot.slane %v248_v41, 1  ;;  %v646_v47 = vadd.f32 %v645_v43, %v641_v40 }
 0x246   :  { %v252_v55 = vrot.slane %v251_v45, 4 }
 0x247   :  { %v250_v8 = vadd.f32 %v249_v46, %v248_v41  ;;  %v647_v52 = vrot.slane %v646_v47, 2 }
 0x248   :  { %v253_v51 = vadd.f32 %v252_v55, %v251_v45 }
 0x249   :  { %v648_v53 = vadd.f32 %v647_v52, %v646_v47  ;;  %v258_v54 = vmul.f32 0.015625, %v250_v8 }
 0x24a   :  { %v254_v56 = vrot.slane %v253_v51, 2 }
 0x24b   :  { %v649_v57 = vrot.slane %v648_v53, 1  ;;  %v644_v48 = vpop.xlane.xlu2 %643  ;;  %v1126_v58 = vsub.f32 %v229_v22, %v258_v54  ;;  %v1128_v60 = vsub.f32 %v228_v15, %v258_v54 }
 0x24c   :  { %v255_v61 = vadd.f32 %v254_v56, %v253_v51  ;;  %v651_v62 = vrot.slane %v644_v48, 4 }
 0x24d   :  { %v650_v59 = vadd.f32 %v649_v57, %v648_v53  ;;  %v265_v63 = vmul.f32 %v1126_v58, %v1126_v58  ;;  %v264_v2 = vmul.f32 %v1128_v60, %v1128_v60  ;;  %v517_v57 = vld [vmem:[%s1366_s10] sm:$0x3] }
 0x24e   :  { %v256_v3 = vrot.slane %v255_v61, 1  ;;  %v652_v6 = vadd.f32 %v651_v62, %v644_v48 }
 0x24f   :  { %v657_v9 = vmul.f32 0.03125, %v650_v59  ;;  %v271_v10 = vsel %vm46_vm0, %v265_v63, 0.0  ;;  %v268_v11 = vsel %vm46_vm0, %v264_v2, 0.0 }
 0x250   :  { %v257_v12 = vadd.f32 %v256_v3, %v255_v61  ;;  %v653_v13 = vrot.slane %v652_v6, 2  ;;  %272 = vadd.xlane.f32.xlu2 %v271_v10  ;;  %269 = vadd.xlane.f32.xlu1 %v268_v11  ;;  %v719_v61 = vsel %vm341_vm1, %v517_v57, 0 }
 0x251   :  { %v1136_v14 = vsub.f32 %v637_v28, %v657_v9  ;;  %728 = vmatpush.bf16.msra.mxu0 %v719_v61 }
 0x252   :  { %v654_v15 = vadd.f32 %v653_v13, %v652_v6  ;;  %v259_v16 = vmul.f32 0.015625, %v257_v12 }
 0x253   :  { %v661_v17 = vmul.f32 %v1136_v14, %v1136_v14 }
 0x254   :  { %v655_v18 = vrot.slane %v654_v15, 1  ;;  %v1140_v19 = vsub.f32 %v231_v29, %v259_v16  ;;  %v1143_v20 = vsub.f32 %v1115_v23, %v259_v16 }
 0x255   :  { %v663_v25 = vsel %vm46_vm0, %v661_v17, 0.0 }
 0x256   :  { %v656_v21 = vadd.f32 %v655_v18, %v654_v15  ;;  %v267_v22 = vmul.f32 %v1140_v19, %v1140_v19  ;;  %v266_v24 = vmul.f32 %v1143_v20, %v1143_v20 }
 0x258   :  { %v658_v1 = vmul.f32 0.03125, %v656_v21  ;;  %664 = vadd.xlane.f32.xlu2 %v663_v25  ;;  %v277_v26 = vsel %vm46_vm0, %v267_v22, 0.0  ;;  %v274_v50 = vsel %vm46_vm0, %v266_v24, 0.0 }
 0x259   :  { %278 = vadd.xlane.f32.xlu1 %v277_v26  ;;  %275 = vadd.xlane.f32.xlu0 %v274_v50 }
 0x25a   :  { %v1152_v27 = vsub.f32 %v638_v33, %v658_v1  ;;  %v63_v33 = vld [vmem:[%s1365_s5] sm:$0x3] }
 0x25b   :  { %v343_v38 = vsel %vm341_vm1, %v63_v33, 0 }
 0x25c   :  { %v662_v23 = vmul.f32 %v1152_v27, %v1152_v27  ;;  %352 = vmatpush.bf16.msra.mxu2 %v343_v38 }
 0x25e   :  { %v666_v49 = vsel %vm46_vm0, %v662_v23, 0.0  ;;  %v55_v23 = vld [vmem:[%s1359_s2 + $0x20] sm:$0xff] }
 0x261   :  { %667 = vadd.xlane.f32.xlu0 %v666_v49  ;;  %v56_v49 = vld [vmem:[%s1359_s2 + $0x28] sm:$0xff] }
 0x2c3   :  { %v270_v28 = vpop.xlane.xlu1 %269  ;;  %v273_v29 = vpop.xlane.xlu2 %272 }
 0x2c4   :  { %v280_v7 = vadd.f32 %v273_v29, %v270_v28 }
 0x2c6   :  { %v281_v0 = vrot.slane %v280_v7, 4 }
 0x2c8   :  { %v282_v30 = vadd.f32 %v281_v0, %v280_v7 }
 0x2ca   :  { %v283_v31 = vrot.slane %v282_v30, 2 }
 0x2cb   :  { %v665_v32 = vpop.xlane.xlu2 %664 }
 0x2cc   :  { %v284_v34 = vadd.f32 %v283_v31, %v282_v30  ;;  %v279_v35 = vpop.xlane.xlu1 %278  ;;  %v276_v36 = vpop.xlane.xlu0 %275  ;;  %v669_v37 = vrot.slane %v665_v32, 4  ;;  %v57_v31 = vld [vmem:[%s1359_s2 + $0x30] sm:$0xff] }
 0x2cd   :  { %v287_v4 = vadd.f32 %v279_v35, %v276_v36 }
 0x2ce   :  { %v285_v5 = vrot.slane %v284_v34, 1  ;;  %v670_v39 = vadd.f32 %v669_v37, %v665_v32 }
 0x2cf   :  { %v288_v40 = vrot.slane %v287_v4, 4 }
 0x2d0   :  { %v286_v41 = vadd.f32 %v285_v5, %v284_v34  ;;  %v671_v42 = vrot.slane %v670_v39, 2  ;;  %v58_v34 = vld [vmem:[%s1359_s2 + $0x38] sm:$0xff] }
 0x2d1   :  { %v289_v43 = vadd.f32 %v288_v40, %v287_v4 }
 0x2d2   :  { %v294_v44 = vmul.f32 0.015625, %v286_v41  ;;  %v672_v45 = vadd.f32 %v671_v42, %v670_v39 }
 0x2d3   :  { %v290_v46 = vrot.slane %v289_v43, 2 }
 0x2d4   :  { %v296_v47 = vadd.f32 1e-05, %v294_v44  ;;  %v673_v55 = vrot.slane %v672_v45, 1  ;;  %v668_v8 = vpop.xlane.xlu0 %667 }
 0x2d5   :  { %v291_v52 = vadd.f32 %v290_v46, %v289_v43  ;;  %v675_v51 = vrot.slane %v668_v8, 4 }
 0x2d6   :  { %851 = vrsqrt.f32 %v296_v47  ;;  %v674_v53 = vadd.f32 %v673_v55, %v672_v45  ;;  %vm304_vm3 = vweird.f32 %v296_v47  ;;  %v513_v55 = vld [vmem:[%s1360_s7 + $0x10] sm:$0xff] }
 0x2d7   :  { %v292_v54 = vrot.slane %v291_v52, 1  ;;  %v676_v56 = vadd.f32 %v675_v51, %v668_v8 }
 0x2d8   :  { %v681_v48 = vmul.f32 0.03125, %v674_v53 }
 0x2d9   :  { %v293_v62 = vadd.f32 %v292_v54, %v291_v52  ;;  %v677_v59 = vrot.slane %v676_v56, 2 }
 0x2da   :  { %v683_v63 = vadd.f32 1e-05, %v681_v48 }
 0x2db   :  { %v295_v2 = vmul.f32 0.015625, %v293_v62  ;;  %v678_v3 = vadd.f32 %v677_v59, %v676_v56  ;;  %v839_v59 = vld [vmem:[%s1364_s6] ss:$0 sm:$0xff] }
 0x2dc   :  { %v852_v6 = vpop.eup %851  ;;  %853 = vrsqrt.f32 %v683_v63  ;;  %vm691_vm7 = vweird.f32 %v683_v63 }
 0x2dd   :  { %v299_v9 = vmul.f32 %v852_v6, %v296_v47  ;;  %v297_v10 = vadd.f32 1e-05, %v295_v2  ;;  %v679_v11 = vrot.slane %v678_v3, 1  ;;  %vm305_vm2 = vweird.f32 %v852_v6 }
 0x2de   :  { %vm306_vm4 = vmor %vm304_vm3, %vm305_vm2 }
 0x2df   :  { %v300_v12 = vmul.f32 %v852_v6, %v299_v9  ;;  %855 = vrsqrt.f32 %v297_v10  ;;  %v680_v13 = vadd.f32 %v679_v11, %v678_v3  ;;  %vm314_vm8 = vweird.f32 %v297_v10  ;;  %v840_v9 = vld [vmem:[%s1367_s11] ss:$0 sm:$0xff] }
 0x2e1   :  { %v301_v15 = vmul.f32 0.5, %v300_v12  ;;  %v682_v16 = vmul.f32 0.03125, %v680_v13 }
 0x2e2   :  { %v854_v17 = vpop.eup %853 }
 0x2e3   :  { %v302_v18 = vsub.f32 1.5, %v301_v15  ;;  %v686_v21 = vmul.f32 %v854_v17, %v683_v63  ;;  %v684_v22 = vadd.f32 1e-05, %v682_v16  ;;  %vm692_vm6 = vweird.f32 %v854_v17 }
 0x2e4   :  { %vm693_vm9 = vmor %vm691_vm7, %vm692_vm6 }
 0x2e5   :  { %v856_v24 = vpop.eup %855  ;;  %v687_v25 = vmul.f32 %v854_v17, %v686_v21  ;;  %857 = vrsqrt.f32 %v684_v22  ;;  %v303_v1 = vmul.f32 %v852_v6, %v302_v18  ;;  %vm701_vm12 = vweird.f32 %v684_v22 }
 0x2e6   :  { %v309_v26 = vmul.f32 %v856_v24, %v297_v10  ;;  %vm315_vm5 = vweird.f32 %v856_v24 }
 0x2e7   :  { %v688_v50 = vmul.f32 0.5, %v687_v25  ;;  %v307_v28 = vsel %vm306_vm4, %v852_v6, %v303_v1  ;;  %vm316_vm10 = vmor %vm314_vm8, %vm315_vm5 }
 0x2e8   :  { %v310_v29 = vmul.f32 %v856_v24, %v309_v26  ;;  %v318_v7 = vmul.f32 %v307_v28, %v1128_v60  ;;  %v319_v0 = vmul.f32 %v307_v28, %v1126_v58 }
 0x2e9   :  { %v689_v30 = vsub.f32 1.5, %v688_v50 }
 0x2ea   :  { %v311_v32 = vmul.f32 0.5, %v310_v29  ;;  %v322_v35 = vmul.f32 %v318_v7, %v55_v23  ;;  %v323_v36 = vmul.f32 %v319_v0, %v56_v49 }
 0x2eb   :  { %v858_v37 = vpop.eup %857  ;;  %v690_v4 = vmul.f32 %v854_v17, %v689_v30 }
 0x2ec   :  { %v312_v33 = vsub.f32 1.5, %v311_v32  ;;  %v696_v60 = vmul.f32 %v858_v37, %v684_v22  ;;  %v1179_v38 = vadd.f32 %v322_v35, %v57_v31  ;;  %v1181_v58 = vadd.f32 %v323_v36, %v58_v34 }
 0x2ed   :  { %v694_v41 = vsel %vm693_vm9, %v854_v17, %v690_v4  ;;  %vm702_vm11 = vweird.f32 %v858_v37 }
 0x2ee   :  { %v697_v5 = vmul.f32 %v858_v37, %v696_v60  ;;  %v313_v39 = vmul.f32 %v856_v24, %v312_v33  ;;  %v330_v40 = vpack.c.bf16 %v1181_v58, %v1179_v38  ;;  %v705_v45 = vmul.f32 %v694_v41, %v1136_v14  ;;  %vm703_vm13 = vmor %vm701_vm12, %vm702_vm11  ;;  %v514_v14 = vld [vmem:[%s1360_s7 + $0x18] sm:$0xff] }
 0x2f0   :  { %v698_v42 = vmul.f32 0.5, %v697_v5  ;;  %v317_v43 = vsel %vm316_vm10, %v856_v24, %v313_v39  ;;  %825 = vmatmul.msk.bf16.vlgmr.msra.gmra.mxu2 %vm46_vm0, %v330_v40  ;;  %v707_v53 = vmul.f32 %v705_v45, %v513_v55 }
 0x2f1   :  { %v320_v46 = vmul.f32 %v317_v43, %v1143_v20  ;;  %v321_v47 = vmul.f32 %v317_v43, %v1140_v19 }
 0x2f2   :  { %v699_v44 = vsub.f32 1.5, %v698_v42  ;;  %v1196_v57 = vadd.f32 %v707_v53, %v514_v14 }
 0x2f3   :  { %v324_v54 = vmul.f32 %v320_v46, %v55_v23  ;;  %v325_v56 = vmul.f32 %v321_v47, %v56_v49 }
 0x2f4   :  { %v700_v8 = vmul.f32 %v858_v37, %v699_v44 }
 0x2f5   :  { %v1200_v48 = vadd.f32 %v324_v54, %v57_v31  ;;  %v1202_v61 = vadd.f32 %v325_v56, %v58_v34 }
 0x2f6   :  { %v704_v52 = vsel %vm703_vm13, %v858_v37, %v700_v8  ;;  %v64_v37 = vld [vmem:[%s1365_s5 + $0x2] sm:$0x3] }
 0x2f7   :  { %v706_v51 = vmul.f32 %v704_v52, %v1152_v27  ;;  %v331_v27 = vpack.c.bf16 %v1202_v61, %v1200_v48  ;;  %v480_v40 = vsel %vm341_vm1, %v64_v37, 0 }
 0x2f8   :  { %489 = vmatpush.bf16.msra.mxu3 %v480_v40 }
 0x2f9   :  { %v708_v20 = vmul.f32 %v706_v51, %v513_v55 }
 0x2fb   :  { %v1198_v19 = vadd.f32 %v708_v20, %v514_v14 }
 0x2fd   :  { %v711_v62 = vpack.c.bf16 %v1198_v19, %v1196_v57 }
 0x2ff   :  { %831 = vmatmul.msk.bf16.vlgmr.msra.gmra.mxu0 %vm46_vm0, %v711_v62 }
 0x300   :  { %826 = vmatmul.msk.bf16.gmra.mxu2 %vm46_vm0, %v331_v27 }
 0x373   :  { %v354_v63 = vpop.f32.mrf.mxu2 }
 0x374   :  { %v1213_v2 = vadd.f32 %v839_v59, %v354_v63 }
 0x376   :  { %v1216_v3 = vmul.f32 0.70710677, %v1213_v2 }
 0x378   :  { %v380_v6 = vand.u32 2147483647, %v1216_v3  ;;  %vm372_vm14 = vcmp.ge.f32.partialorder %v1216_v3, 0.0 }
 0x37a   :  { %v384_v10 = vmul.f32 0.3275911, %v380_v6  ;;  %v432_v23 = vsub.f32 0.0, %v380_v6 }
 0x37b   :  { %v356_v11 = vpop.f32.mrf.mxu2 }
 0x37c   :  { %v730_v12 = vpop.f32.mrf.mxu0  ;;  %v388_v13 = vadd.f32 1.0, %v384_v10  ;;  %v1222_v15 = vadd.f32 %v839_v59, %v356_v11  ;;  %v436_v32 = vmul.f32 %v432_v23, %v380_v6 }
 0x37d   :  { %v1224_v16 = vadd.f32 %v840_v9, %v730_v12 }
 0x37e   :  { %859 = vrcp.f32 %v388_v13  ;;  %v1227_v17 = vmul.f32 0.70710677, %v1222_v15  ;;  %v440_v42 = vmul.f32 1.442695, %v436_v32 }
 0x37f   :  { %v1230_v18 = vmul.f32 0.70710677, %v1224_v16 }
 0x380   :  { %v381_v21 = vand.u32 2147483647, %v1227_v17  ;;  %vm373_vm15 = vcmp.ge.f32.partialorder %v1227_v17, 0.0 }
 0x381   :  { %v743_v22 = vand.u32 2147483647, %v1230_v18 }
 0x382   :  { %v385_v24 = vmul.f32 0.3275911, %v381_v21  ;;  %v433_v5 = vsub.f32 0.0, %v381_v21 }
 0x383   :  { %v745_v25 = vmul.f32 0.3275911, %v743_v22  ;;  %v359_v1 = vpop.f32.mrf.mxu2  ;;  %v769_v52 = vsub.f32 0.0, %v743_v22 }
 0x384   :  { %v732_v26 = vpop.f32.mrf.mxu0  ;;  %v860_v50 = vpop.eup %859  ;;  %v389_v49 = vadd.f32 1.0, %v385_v24  ;;  %v1234_v28 = vadd.f32 %v839_v59, %v359_v1  ;;  %v437_v56 = vmul.f32 %v433_v5, %v381_v21 }
 0x385   :  { %v1236_v29 = vadd.f32 %v840_v9, %v732_v26  ;;  %v396_v7 = vmul.f32 1.0614054, %v860_v50  ;;  %v747_v0 = vadd.f32 1.0, %v745_v25  ;;  %v771_v6 = vmul.f32 %v769_v52, %v743_v22 }
 0x386   :  { %861 = vrcp.f32 %v389_v49  ;;  %v1239_v30 = vmul.f32 0.70710677, %v1234_v28  ;;  %v442_v13 = vmul.f32 1.442695, %v437_v56 }
 0x387   :  { %v400_v31 = vadd.f32 -1.4531521, %v396_v7  ;;  %863 = vrcp.f32 %v747_v0  ;;  %v1245_v35 = vmul.f32 0.70710677, %v1236_v29  ;;  %v773_v0 = vmul.f32 1.442695, %v771_v6 }
 0x388   :  { %v1242_v34 = vand.u32 2147483647, %v1239_v30  ;;  %vm374_vm3 = vcmp.ge.f32.partialorder %v1239_v30, 0.0 }
 0x389   :  { %v404_v36 = vmul.f32 %v860_v50, %v400_v31  ;;  %v744_v4 = vand.u32 2147483647, %v1245_v35  ;;  %vm740_vm2 = vcmp.ge.f32.partialorder %v1245_v35, 0.0 }
 0x38a   :  { %v386_v33 = vmul.f32 0.3275911, %v1242_v34  ;;  %v434_v22 = vsub.f32 0.0, %v1242_v34 }
 0x38b   :  { %v408_v60 = vadd.f32 1.4214138, %v404_v36  ;;  %v361_v39 = vpop.f32.mrf.mxu2  ;;  %v746_v44 = vmul.f32 0.3275911, %v744_v4  ;;  %v770_v31 = vsub.f32 0.0, %v744_v4 }
 0x38c   :  { %v1253_v41 = vpop.eup %861  ;;  %v390_v43 = vadd.f32 1.0, %v386_v33  ;;  %v1258_v55 = vadd.f32 %v839_v59, %v361_v39  ;;  %v518_v59 = vld [vmem:[%s1366_s10 + $0x2] sm:$0x3] }
 0x38d   :  { %v1255_v45 = vpop.eup %863  ;;  %v412_v46 = vmul.f32 %v860_v50, %v408_v60  ;;  %v397_v47 = vmul.f32 1.0614054, %v1253_v41  ;;  %v748_v51 = vadd.f32 1.0, %v746_v44  ;;  %v795_v10 = vsel %vm341_vm1, %v518_v59, 0 }
 0x38e   :  { %v751_v8 = vmul.f32 1.0614054, %v1255_v45  ;;  %865 = vrcp.f32 %v390_v43  ;;  %v1262_v20 = vmul.f32 0.70710677, %v1258_v55  ;;  %804 = vmatpush.bf16.msra.mxu1 %v795_v10  ;;  %vm739_vm1 = vcmp.ge.f32.partialorder %v1230_v18, 0.0 }
 0x38f   :  { %v416_v53 = vadd.f32 -0.28449672, %v412_v46  ;;  %v401_v54 = vadd.f32 -1.4531521, %v397_v47  ;;  %867 = vpow2.f32 %v440_v42  ;;  %v438_v42 = vmul.f32 %v434_v22, %v1242_v34 }
 0x390   :  { %v753_v14 = vadd.f32 -1.4531521, %v751_v8  ;;  %869 = vrcp.f32 %v748_v51  ;;  %v1270_v9 = vand.u32 2147483647, %v1262_v20  ;;  %v772_v46 = vmul.f32 %v770_v31, %v744_v4 }
 0x391   :  { %v420_v62 = vmul.f32 %v860_v50, %v416_v53  ;;  %v405_v27 = vmul.f32 %v1253_v41, %v401_v54  ;;  %871 = vpow2.f32 %v442_v13  ;;  %v884_v51 = vmov -1.0  }
 0x392   :  { %v755_v63 = vmul.f32 %v1255_v45, %v753_v14  ;;  %v387_v25 = vmul.f32 0.3275911, %v1270_v9  ;;  %v376_v53 = vsel %vm372_vm14, 1.0, %v884_v51  ;;  %v435_v6 = vsub.f32 0.0, %v1270_v9 }
 0x393   :  { %v424_v11 = vadd.f32 0.2548296, %v420_v62  ;;  %v409_v12 = vadd.f32 1.4214138, %v405_v27  ;;  %v444_v62 = vmul.f32 1.442695, %v438_v42 }
 0x394   :  { %v1273_v21 = vpop.eup %865  ;;  %v757_v24 = vadd.f32 1.4214138, %v755_v63  ;;  %v391_v32 = vadd.f32 1.0, %v387_v25  ;;  %v775_v63 = vmul.f32 1.442695, %v772_v46  ;;  %v439_v22 = vmul.f32 %v435_v6, %v1270_v9 }
 0x395   :  { %v428_v1 = vmul.f32 %v860_v50, %v424_v11  ;;  %v413_v26 = vmul.f32 %v1253_v41, %v409_v12  ;;  %v398_v23 = vmul.f32 1.0614054, %v1273_v21  ;;  %v868_v49 = vpop.eup %867  ;;  %v378_v35 = vsel %vm374_vm3, 1.0, %v884_v51 }
 0x396   :  { %v759_v7 = vmul.f32 %v1255_v45, %v757_v24  ;;  %v1280_v36 = vpop.eup %869  ;;  %873 = vrcp.f32 %v391_v32  ;;  %v377_v24 = vsel %vm373_vm15, 1.0, %v884_v51  ;;  %v364_v32 = vmul.f32 0.5, %v1213_v2 }
 0x397   :  { %v448_v37 = vmul.f32 %v868_v49, %v428_v1  ;;  %v417_v33 = vadd.f32 -0.28449672, %v413_v26  ;;  %v402_v60 = vadd.f32 -1.4531521, %v398_v23  ;;  %v752_v50 = vmul.f32 1.0614054, %v1280_v36  ;;  %v872_v56 = vpop.eup %871 }
 0x398   :  { %v761_v5 = vadd.f32 -0.28449672, %v759_v7  ;;  %875 = vpow2.f32 %v773_v0  ;;  %v446_v42 = vmul.f32 1.442695, %v439_v22  ;;  %v736_v6 = vmul.f32 0.5, %v1236_v29 }
 0x399   :  { %v421_v39 = vmul.f32 %v1253_v41, %v417_v33  ;;  %v406_v40 = vmul.f32 %v1273_v21, %v402_v60  ;;  %v754_v44 = vadd.f32 -1.4531521, %v752_v50  ;;  %v452_v47 = vsub.f32 1.0, %v448_v37 }
 0x39a   :  { %v763_v43 = vmul.f32 %v1255_v45, %v761_v5  ;;  %877 = vpow2.f32 %v444_v62  ;;  %v365_v33 = vmul.f32 0.5, %v1222_v15  ;;  %vm375_vm4 = vcmp.ge.f32.partialorder %v1262_v20, 0.0  ;;  %v841_v20 = vld [vmem:[%s1364_s6 + $0x1] ss:$0 sm:$0xff] }
 0x39b   :  { %v425_v8 = vadd.f32 0.2548296, %v421_v39  ;;  %v410_v52 = vadd.f32 1.4214138, %v406_v40  ;;  %v756_v3 = vmul.f32 %v1280_v36, %v754_v44  ;;  %v456_v10 = vmul.f32 %v452_v47, %v376_v53 }
 0x39c   :  { %v765_v54 = vadd.f32 0.2548296, %v763_v43  ;;  %v874_v27 = vpop.eup %873  ;;  %879 = vpow2.f32 %v775_v63  ;;  %v735_v63 = vmul.f32 0.5, %v1224_v16  ;;  %v366_v16 = vmul.f32 0.5, %v1234_v28 }
 0x39d   :  { %v429_v14 = vmul.f32 %v1253_v41, %v425_v8  ;;  %v414_v34 = vmul.f32 %v1273_v21, %v410_v52  ;;  %v758_v59 = vadd.f32 1.4214138, %v756_v3  ;;  %v399_v13 = vmul.f32 1.0614054, %v874_v27 }
 0x39e   :  { %v767_v4 = vmul.f32 %v1255_v45, %v765_v54  ;;  %v876_v25 = vpop.eup %875  ;;  %v460_v49 = vadd.f32 1.0, %v456_v10  ;;  %v741_v8 = vsel %vm739_vm1, 1.0, %v884_v51  ;;  %881 = vpow2.f32 %v446_v42 }
 0x39f   :  { %v449_v11 = vmul.f32 %v872_v56, %v429_v14  ;;  %v418_v12 = vadd.f32 -0.28449672, %v414_v34  ;;  %v760_v17 = vmul.f32 %v1280_v36, %v758_v59  ;;  %v403_v26 = vadd.f32 -1.4531521, %v399_v13 }
 0x3a0   :  { %v777_v23 = vmul.f32 %v876_v25, %v767_v4  ;;  %v878_v9 = vpop.eup %877  ;;  %v464_v43 = vmul.f32 %v460_v49, %v364_v32  ;;  %v742_v14 = vsel %vm740_vm2, 1.0, %v884_v51  ;;  %v379_v25 = vsel %vm375_vm4, 1.0, %v884_v51  ;;  %v842_v49 = vld [vmem:[%s1367_s11 + $0x1] ss:$0 sm:$0xff] }
 0x3a1   :  { %v453_v41 = vsub.f32 1.0, %v449_v11  ;;  %v422_v1 = vmul.f32 %v1273_v21, %v418_v12  ;;  %v762_v45 = vadd.f32 -0.28449672, %v760_v17  ;;  %v407_v31 = vmul.f32 %v874_v27, %v403_v26 }
 0x3a2   :  { %v779_v39 = vsub.f32 1.0, %v777_v23  ;;  %v880_v47 = vpop.eup %879 }
 0x3a3   :  { %v457_v7 = vmul.f32 %v453_v41, %v377_v24  ;;  %v426_v0 = vadd.f32 0.2548296, %v422_v1  ;;  %v764_v37 = vmul.f32 %v1280_v36, %v762_v45  ;;  %v411_v50 = vadd.f32 1.4214138, %v407_v31 }
 0x3a4   :  { %v781_v54 = vmul.f32 %v779_v39, %v741_v8  ;;  %v882_v59 = vpop.eup %881  ;;  %v367_v1 = vmul.f32 0.5, %v1258_v55 }
 0x3a5   :  { %v461_v60 = vadd.f32 1.0, %v457_v7  ;;  %v430_v5 = vmul.f32 %v1273_v21, %v426_v0  ;;  %v766_v40 = vadd.f32 0.2548296, %v764_v37  ;;  %v415_v46 = vmul.f32 %v874_v27, %v411_v50 }
 0x3a6   :  { %v783_v34 = vadd.f32 1.0, %v781_v54 }
 0x3a7   :  { %v465_v44 = vmul.f32 %v461_v60, %v365_v33  ;;  %v768_v2 = vmul.f32 %v1280_v36, %v766_v40  ;;  %v450_v52 = vmul.f32 %v878_v9, %v430_v5  ;;  %v419_v15 = vadd.f32 -0.28449672, %v415_v46 }
 0x3a8   :  { %v785_v30 = vmul.f32 %v783_v34, %v735_v63 }
 0x3a9   :  { %v468_v53 = vpack.c.bf16 %v465_v44, %v464_v43  ;;  %v778_v21 = vmul.f32 %v880_v47, %v768_v2  ;;  %v423_v18 = vmul.f32 %v874_v27, %v419_v15  ;;  %v454_v56 = vsub.f32 1.0, %v450_v52 }
 0x3ab   :  { %827 = vmatmul.msk.bf16.vlgmr.msra.gmra.mxu3 %vm46_vm0, %v468_v53  ;;  %v780_v3 = vsub.f32 1.0, %v778_v21  ;;  %v427_v36 = vadd.f32 0.2548296, %v423_v18  ;;  %v458_v11 = vmul.f32 %v454_v56, %v378_v35 }
 0x3ad   :  { %v782_v62 = vmul.f32 %v780_v3, %v742_v14  ;;  %v431_v4 = vmul.f32 %v874_v27, %v427_v36  ;;  %v462_v41 = vadd.f32 1.0, %v458_v11 }
 0x3af   :  { %v784_v10 = vadd.f32 1.0, %v782_v62  ;;  %v451_v12 = vmul.f32 %v882_v59, %v431_v4  ;;  %v466_v26 = vmul.f32 %v462_v41, %v366_v16 }
 0x3b1   :  { %v786_v13 = vmul.f32 %v784_v10, %v736_v6  ;;  %v455_v24 = vsub.f32 1.0, %v451_v12 }
 0x3b3   :  { %v787_v17 = vpack.c.bf16 %v786_v13, %v785_v30  ;;  %v459_v27 = vmul.f32 %v455_v24, %v379_v25 }
 0x3b5   :  { %832 = vmatmul.msk.bf16.vlgmr.msra.gmra.mxu1 %vm46_vm0, %v787_v17  ;;  %v463_v29 = vadd.f32 1.0, %v459_v27 }
 0x3b7   :  { %v467_v23 = vmul.f32 %v463_v29, %v367_v1 }
 0x3b9   :  { %v469_v45 = vpack.c.bf16 %v467_v23, %v466_v26 }
 0x3bb   :  { %828 = vmatmul.msk.bf16.gmra.mxu3 %vm46_vm0, %v469_v45 }
 0x42e   :  { %v491_v22 = vpop.f32.mrf.mxu3 }
 0x42f   :  { %v492_v51 = vadd.f32 %v841_v20, %v491_v22 }
 0x431   :  { %v501_v28 = vadd.f32 %v492_v51, %v1179_v38 }
 0x432   :  { %v806_v55 = vpop.f32.mrf.mxu1 }
 0x433   :  { %505 = vst.msk [vmem:[%s1357_s12 + $0x10] sm:$0xff] %vm46_vm0, %v501_v28  ;;  %v807_v7 = vadd.f32 %v842_v49, %v806_v55 }
 0x435   :  { %v811_v0 = vadd.f32 %v807_v7, %v1196_v57 }
 0x436   :  { %v493_v31 = vpop.f32.mrf.mxu3 }
 0x437   :  { %v494_v32 = vadd.f32 %v841_v20, %v493_v31  ;;  %813 = vst.msk [vmem:[%s1357_s12 + $0x20] sm:$0xff] %vm46_vm0, %v811_v0 }
 0x439   :  { %v502_v37 = vadd.f32 %v494_v32, %v1181_v58 }
 0x43a   :  { %v808_v38 = vpop.f32.mrf.mxu1 }
 0x43b   :  { %506 = vst.msk [vmem:[%s1357_s12 + $0x18] sm:$0xff] %vm46_vm0, %v502_v37  ;;  %v809_v33 = vadd.f32 %v842_v49, %v808_v38 }
 0x43d   :  { %v812_v60 = vadd.f32 %v809_v33, %v1198_v19 }
 0x43e   :  { %v496_v57 = vpop.f32.mrf.mxu3 }
 0x43f   :  { %814 = vst.msk [vmem:[%s1357_s12 + $0x48] sm:$0xff] %vm46_vm0, %v812_v60  ;;  %v497_v5 = vadd.f32 %v841_v20, %v496_v57 }
 0x441   :  { %v503_v50 = vadd.f32 %v497_v5, %v1200_v48 }
 0x443   :  { %507 = vst.msk [vmem:[%s1357_s12 + $0x38] sm:$0xff] %vm46_vm0, %v503_v50 }
 0x446   :  { %v498_v58 = vpop.f32.mrf.mxu3 }
 0x447   :  { %v499_v39 = vadd.f32 %v841_v20, %v498_v58 }
 0x449   :  { %v504_v40 = vadd.f32 %v499_v39, %v1202_v61 }
 0x44b   :  { %508 = vst.msk [vmem:[%s1357_s12 + $0x40] sm:$0xff] %vm46_vm0, %v504_v40 }

</bundles_post_ra>
